<compile_context>
chip_gen: v7x
topology: tpu7x:2x2x1
jax: 0.10.0
libtpu: 0.0.40
codegen_flags: <defaults>
</compile_context>

<pallas_src>
import jax
import jax.numpy as jnp
from jax.experimental import pallas as pl
from jax.experimental.pallas import tpu as pltpu

# ----------------------------- config (small, synthetic) -----------------------------
B = 2            # batch
SEQ_LEN = 32     # seq_len == d_model  (configs.d_model = configs.seq_len)
ENC_IN = 8       # number of variates -> attention sequence length (tokens = channels)
PRED_LEN = 16    # pred_len (<= seq_len)
N_HEADS = 4
D_MODEL = SEQ_LEN
D_K = D_MODEL // N_HEADS
D_FF = 64
E_LAYERS = 2
REVIN_EPS = 1e-5
LN_EPS = 1e-5
NLN = 2 * E_LAYERS + 1          # per-layer LN pairs + encoder final norm

PARAM_NAMES = ["rev", "w_attn", "b_attn", "ln_g", "ln_b", "w1", "b1", "w2", "b2"]


# ----------------------------- shared math (kernel & pure-JAX reference) -------------
def _deformer_math(x_stack, BB, p, recip):
    """x_stack: (BB*C, L) channel-major rows, batches stacked along the sublane axis.
    p: dict of plain arrays (aw, ab, w_attn, b_attn, ln_g, ln_b, w1, b1, w2, b2).
    recip: reciprocal fn (pl.reciprocal in-kernel, exact divide in the reference).
    Returns a list of BB arrays of shape (PRED_LEN, C) (already output layout)."""
    C = x_stack.shape[0] // BB
    D = D_MODEL
    aw, ab = p["aw"], p["ab"]                                     # (C, 1)
    aw_t = aw if BB == 1 else jnp.concatenate([aw] * BB, axis=0)  # (BB*C, 1)
    ab_t = ab if BB == 1 else jnp.concatenate([ab] * BB, axis=0)

    # ---- RevIN 'norm' (per batch, per channel over time; biased variance) ----
    # One reduction over the whole batch-stacked slab.
    mean = jnp.mean(x_stack, axis=-1, keepdims=True)              # (BB*C, 1)
    var = jnp.mean((x_stack - mean) ** 2, axis=-1, keepdims=True)
    std = jnp.sqrt(var + REVIN_EPS)
    h = (x_stack - mean) / std * aw_t + ab_t                      # (BB*C, D)

    def ln(z, g, bta):
        mu = jnp.mean(z, axis=-1, keepdims=True)
        vv = jnp.mean((z - mu) ** 2, axis=-1, keepdims=True)
        return (z - mu) * jax.lax.rsqrt(vv + LN_EPS) * g + bta

    scale = 1.0 / (D_K ** 0.5)
    for l in range(E_LAYERS):
        w_attn = p["w_attn"][l]                                   # (D, 4D): Wq|Wk|Wv|Wo
        b_attn = p["b_attn"][l]                                   # (1, 4D)

        # fused QKV projection: one (BB*C, D) x (D, 3D) matmul
        qkv = jnp.dot(h, w_attn[:, :3 * D],
                      preferred_element_type=jnp.float32) + b_attn[:, :3 * D]
        q = qkv[:, :D] * scale          # fold attention scale into Q once per layer
        k = qkv[:, D:2 * D]
        v = qkv[:, 2 * D:3 * D]

        # per-batch, per-head full attention; heads lane-concatenated
        ctx_rows = []
        for b in range(BB):
            rs = slice(b * C, (b + 1) * C)
            qb, kb, vb = q[rs], k[rs], v[rs]
            heads = []
            for hh in range(N_HEADS):
                cs = slice(hh * D_K, (hh + 1) * D_K)
                s = jax.lax.dot_general(qb[:, cs], kb[:, cs],
                                        (((1,), (1,)), ((), ())),
                                        preferred_element_type=jnp.float32)
                s = s - jnp.max(s, axis=-1, keepdims=True)
                e = jnp.exp(s)
                a = e * recip(jnp.sum(e, axis=-1, keepdims=True))
                heads.append(jnp.dot(a, vb[:, cs],
                                     preferred_element_type=jnp.float32))
            ctx_rows.append(heads[0] if N_HEADS == 1
                            else jnp.concatenate(heads, axis=-1))
        ctx = ctx_rows[0] if BB == 1 else jnp.concatenate(ctx_rows, axis=0)

        # single out-projection over concatenated heads
        attn_out = jnp.dot(ctx, w_attn[:, 3 * D:],
                           preferred_element_type=jnp.float32) + b_attn[:, 3 * D:]

        x1 = ln(h + attn_out, p["ln_g"][2 * l:2 * l + 1], p["ln_b"][2 * l:2 * l + 1])
        # 1x1 Conv1d pair == per-token Linear(D->F) ReLU Linear(F->D)
        y = jnp.maximum(jnp.dot(x1, p["w1"][l],
                                preferred_element_type=jnp.float32) + p["b1"][l], 0.0)
        y = jnp.dot(y, p["w2"][l], preferred_element_type=jnp.float32) + p["b2"][l]
        h = ln(x1 + y, p["ln_g"][2 * l + 1:2 * l + 2], p["ln_b"][2 * l + 1:2 * l + 2])

    # encoder final LayerNorm
    h = ln(h, p["ln_g"][2 * E_LAYERS:2 * E_LAYERS + 1],
           p["ln_b"][2 * E_LAYERS:2 * E_LAYERS + 1])

    # last pred_len time steps + RevIN 'denorm', done on the stacked slab
    inv_w = 1.0 / (aw_t + REVIN_EPS * REVIN_EPS)                  # (BB*C, 1)
    o = (h[:, D - PRED_LEN:] - ab_t) * inv_w * std + mean         # (BB*C, P)
    # emit per-batch in (P, C) output layout
    return [jnp.transpose(o[b * C:(b + 1) * C], (1, 0)) for b in range(BB)]


# ----------------------------- Pallas kernel -----------------------------------------
def deformer_kernel(x_ref, rev_ref, w_attn_ref, b_attn_ref, ln_g_ref, ln_b_ref,
                    w1_ref, b1_ref, w2_ref, b2_ref, out_ref):
    BB = x_ref.shape[0]                     # batches handled by this invocation
    p = dict(
        aw=rev_ref[0], ab=rev_ref[1],                            # (C, 1) each
        w_attn=w_attn_ref[...], b_attn=b_attn_ref[...],
        ln_g=ln_g_ref[...], ln_b=ln_b_ref[...],
        w1=w1_ref[...], b1=b1_ref[...], w2=w2_ref[...], b2=b2_ref[...],
    )
    # fused input transpose: (L, C) -> (C, L) per batch element (XLU), stack sublane-wise
    xts = [jnp.transpose(x_ref[b], (1, 0)) for b in range(BB)]
    x_stack = xts[0] if BB == 1 else jnp.concatenate(xts, axis=0)
    outs = _deformer_math(x_stack, BB, p, lambda s: pl.reciprocal(s, approx=True))
    for b in range(BB):
        out_ref[b] = outs[b]                                     # (P, C), output layout


def _batches_per_call(total_batch):
    """1 batch per grid step on multi-TensorCore chips (shard across cores);
    all batches in one invocation on single-TC chips (v5e / v6e)."""
    kind = ""
    try:
        kind = jax.devices()[0].device_kind.lower()
    except Exception:
        pass
    multi_tc = any(tag in kind for tag in ("v7", "7x", "v4", "v5p"))
    return 1 if multi_tc else total_batch


def deformer_forward(x_enc, params, batch_block=None):
    """x_enc: (B, SEQ_LEN, ENC_IN) like the PyTorch model. Returns (B, PRED_LEN, ENC_IN).
    No host-side transposes: layout conversion happens inside the kernel."""
    x_enc = x_enc.astype(jnp.float32)
    Bn, L, C = x_enc.shape
    BB = batch_block if batch_block is not None else _batches_per_call(Bn)
    assert Bn % BB == 0
    grid = (Bn // BB,)

    param_arrays = [params[n] for n in PARAM_NAMES]
    in_specs = [pl.BlockSpec((BB, L, C), lambda i: (i, 0, 0))]
    for arr in param_arrays:
        nd = arr.ndim
        in_specs.append(pl.BlockSpec(arr.shape, lambda i, nd=nd: (0,) * nd))

    return pl.pallas_call(
        deformer_kernel,
        out_shape=jax.ShapeDtypeStruct((Bn, PRED_LEN, C), jnp.float32),
        grid=grid,
        in_specs=in_specs,
        out_specs=pl.BlockSpec((BB, PRED_LEN, C), lambda i: (i, 0, 0)),
        compiler_params=pltpu.CompilerParams(dimension_semantics=("parallel",)),
    )(x_enc, *param_arrays)


# ----------------------------- deterministic synthetic parameters --------------------
def make_params(key):
    keys = jax.random.split(key, 12)
    nrm = lambda k, shape: (0.05 * jax.random.normal(k, shape)).astype(jnp.float32)
    E, D, F, C = E_LAYERS, D_MODEL, D_FF, ENC_IN
    wq, wk = nrm(keys[0], (E, D, D)), nrm(keys[1], (E, D, D))
    wv, wo = nrm(keys[2], (E, D, D)), nrm(keys[3], (E, D, D))
    bq, bk = nrm(keys[4], (E, 1, D)), nrm(keys[5], (E, 1, D))
    bv, bo = nrm(keys[6], (E, 1, D)), nrm(keys[7], (E, 1, D))
    return dict(
        # RevIN affine: [0] = weight (ones), [1] = bias (zeros)  -> (2, C, 1)
        rev=jnp.concatenate([jnp.ones((1, C, 1), jnp.float32),
                             jnp.zeros((1, C, 1), jnp.float32)], axis=0),
        w_attn=jnp.concatenate([wq, wk, wv, wo], axis=-1),       # (E, D, 4D)
        b_attn=jnp.concatenate([bq, bk, bv, bo], axis=-1),       # (E, 1, 4D)
        ln_g=jnp.ones((NLN, D), jnp.float32),                    # LN gains
        ln_b=jnp.zeros((NLN, D), jnp.float32),                   # LN biases
        w1=nrm(keys[8], (E, D, F)), b1=nrm(keys[9], (E, 1, F)),
        w2=nrm(keys[10], (E, F, D)), b2=nrm(keys[11], (E, 1, D)),
    )


# ----------------------------- main ---------------------------------------------------
if __name__ == "__main__":
    key = jax.random.PRNGKey(0)
    k_x, k_p = jax.random.split(key)

    x_enc = jax.random.normal(k_x, (B, SEQ_LEN, ENC_IN), dtype=jnp.float32)
    # x_mark_enc / x_dec / x_mark_dec are accepted by the PyTorch forward but unused.
    params = make_params(k_p)

    out = deformer_forward(x_enc, params)
    out = jax.block_until_ready(out)
    assert out.shape == (B, PRED_LEN, ENC_IN), out.shape

    # pure-JAX reference: identical math, exact softmax reciprocal.
    p_ref = dict(aw=params["rev"][0], ab=params["rev"][1],
                 w_attn=params["w_attn"], b_attn=params["b_attn"],
                 ln_g=params["ln_g"], ln_b=params["ln_b"],
                 w1=params["w1"], b1=params["b1"],
                 w2=params["w2"], b2=params["b2"])
    x_stack_ref = jnp.concatenate([jnp.transpose(x_enc[b], (1, 0)) for b in range(B)],
                                  axis=0)
    ref = jnp.stack(_deformer_math(x_stack_ref, B, p_ref, lambda s: 1.0 / s), axis=0)

    # tolerance loosened slightly because the kernel uses pl.reciprocal(approx=True)
    err = float(jnp.max(jnp.abs(out - ref)))
    assert jnp.allclose(out, ref, atol=5e-3, rtol=5e-3), err

    print("KERNEL_OK")
</pallas_src>

<mosaic_0001>
module attributes {stable_mosaic.version = 11 : i64} {
  func.func @deformer_kernel(%arg0: i32, %arg1: memref<2x32x8xf32, #tpu.memory_space<vmem>>, %arg2: memref<2x8x1xf32, #tpu.memory_space<vmem>>, %arg3: memref<2x32x128xf32, #tpu.memory_space<vmem>>, %arg4: memref<2x1x128xf32, #tpu.memory_space<vmem>>, %arg5: memref<5x32xf32, #tpu.memory_space<vmem>>, %arg6: memref<5x32xf32, #tpu.memory_space<vmem>>, %arg7: memref<2x32x64xf32, #tpu.memory_space<vmem>>, %arg8: memref<2x1x64xf32, #tpu.memory_space<vmem>>, %arg9: memref<2x64x32xf32, #tpu.memory_space<vmem>>, %arg10: memref<2x1x32xf32, #tpu.memory_space<vmem>>, %arg11: memref<2x16x8xf32, #tpu.memory_space<vmem>>) attributes {dimension_semantics = [#tpu.dimension_semantics<parallel>], iteration_bounds = array<i64: 1>, scalar_prefetch = 0 : i64, scratch_operands = 0 : i64, tpu.core_type = #tpu.core_type<tc>, window_params = [{transform_indices = @transform_0, window_bounds = array<i64: 2, 32, 8>}, {pipeline_mode = #tpu.pipeline_mode<synchronous>, transform_indices = @transform_1, window_bounds = array<i64: 2, 8, 1>}, {pipeline_mode = #tpu.pipeline_mode<synchronous>, transform_indices = @transform_2, window_bounds = array<i64: 2, 32, 128>}, {pipeline_mode = #tpu.pipeline_mode<synchronous>, transform_indices = @transform_3, window_bounds = array<i64: 2, 1, 128>}, {pipeline_mode = #tpu.pipeline_mode<synchronous>, transform_indices = @transform_4, window_bounds = array<i64: 5, 32>}, {pipeline_mode = #tpu.pipeline_mode<synchronous>, transform_indices = @transform_5, window_bounds = array<i64: 5, 32>}, {pipeline_mode = #tpu.pipeline_mode<synchronous>, transform_indices = @transform_6, window_bounds = array<i64: 2, 32, 64>}, {pipeline_mode = #tpu.pipeline_mode<synchronous>, transform_indices = @transform_7, window_bounds = array<i64: 2, 1, 64>}, {pipeline_mode = #tpu.pipeline_mode<synchronous>, transform_indices = @transform_8, window_bounds = array<i64: 2, 64, 32>}, {pipeline_mode = #tpu.pipeline_mode<synchronous>, transform_indices = @transform_9, window_bounds = array<i64: 2, 1, 32>}, {transform_indices = @transform_10, window_bounds = array<i64: 2, 16, 8>}]} {
    %c0 = arith.constant 0 : index
    %c0_0 = arith.constant 0 : index
    %c0_1 = arith.constant 0 : index
    %0 = vector.load %arg2[%c0, %c0_0, %c0_1] : memref<2x8x1xf32, #tpu.memory_space<vmem>>, vector<1x8x1xf32>
    %1 = vector.shape_cast %0 : vector<1x8x1xf32> to vector<8x1xf32>
    %c1 = arith.constant 1 : index
    %c0_2 = arith.constant 0 : index
    %c0_3 = arith.constant 0 : index
    %2 = vector.load %arg2[%c1, %c0_2, %c0_3] : memref<2x8x1xf32, #tpu.memory_space<vmem>>, vector<1x8x1xf32>
    %3 = vector.shape_cast %2 : vector<1x8x1xf32> to vector<8x1xf32>
    %c0_4 = arith.constant 0 : index
    %c0_5 = arith.constant 0 : index
    %c0_6 = arith.constant 0 : index
    %4 = vector.load %arg3[%c0_4, %c0_5, %c0_6] : memref<2x32x128xf32, #tpu.memory_space<vmem>>, vector<2x32x128xf32>
    %c0_7 = arith.constant 0 : index
    %c0_8 = arith.constant 0 : index
    %c0_9 = arith.constant 0 : index
    %5 = vector.load %arg4[%c0_7, %c0_8, %c0_9] : memref<2x1x128xf32, #tpu.memory_space<vmem>>, vector<2x1x128xf32>
    %c0_10 = arith.constant 0 : index
    %c0_11 = arith.constant 0 : index
    %6 = vector.load %arg5[%c0_10, %c0_11] : memref<5x32xf32, #tpu.memory_space<vmem>>, vector<5x32xf32>
    %c0_12 = arith.constant 0 : index
    %c0_13 = arith.constant 0 : index
    %7 = vector.load %arg6[%c0_12, %c0_13] : memref<5x32xf32, #tpu.memory_space<vmem>>, vector<5x32xf32>
    %c0_14 = arith.constant 0 : index
    %c0_15 = arith.constant 0 : index
    %c0_16 = arith.constant 0 : index
    %8 = vector.load %arg7[%c0_14, %c0_15, %c0_16] : memref<2x32x64xf32, #tpu.memory_space<vmem>>, vector<2x32x64xf32>
    %c0_17 = arith.constant 0 : index
    %c0_18 = arith.constant 0 : index
    %c0_19 = arith.constant 0 : index
    %9 = vector.load %arg8[%c0_17, %c0_18, %c0_19] : memref<2x1x64xf32, #tpu.memory_space<vmem>>, vector<2x1x64xf32>
    %c0_20 = arith.constant 0 : index
    %c0_21 = arith.constant 0 : index
    %c0_22 = arith.constant 0 : index
    %10 = vector.load %arg9[%c0_20, %c0_21, %c0_22] : memref<2x64x32xf32, #tpu.memory_space<vmem>>, vector<2x64x32xf32>
    %c0_23 = arith.constant 0 : index
    %c0_24 = arith.constant 0 : index
    %c0_25 = arith.constant 0 : index
    %11 = vector.load %arg10[%c0_23, %c0_24, %c0_25] : memref<2x1x32xf32, #tpu.memory_space<vmem>>, vector<2x1x32xf32>
    %c0_26 = arith.constant 0 : index
    %c0_27 = arith.constant 0 : index
    %c0_28 = arith.constant 0 : index
    %12 = vector.load %arg1[%c0_26, %c0_27, %c0_28] : memref<2x32x8xf32, #tpu.memory_space<vmem>>, vector<1x32x8xf32>
    %13 = vector.shape_cast %12 : vector<1x32x8xf32> to vector<32x8xf32>
    %14 = tpu.transpose %13, [1, 0] : vector<32x8xf32> -> vector<8x32xf32>
    %c1_29 = arith.constant 1 : index
    %c0_30 = arith.constant 0 : index
    %c0_31 = arith.constant 0 : index
    %15 = vector.load %arg1[%c1_29, %c0_30, %c0_31] : memref<2x32x8xf32, #tpu.memory_space<vmem>>, vector<1x32x8xf32>
    %16 = vector.shape_cast %15 : vector<1x32x8xf32> to vector<32x8xf32>
    %17 = tpu.transpose %16, [1, 0] : vector<32x8xf32> -> vector<8x32xf32>
    %18 = tpu.concatenate %14, %17 in 0 : vector<8x32xf32>, vector<8x32xf32> -> vector<16x32xf32>
    %19 = tpu.concatenate %1, %1 in 0 : vector<8x1xf32>, vector<8x1xf32> -> vector<16x1xf32>
    %20 = tpu.concatenate %3, %3 in 0 : vector<8x1xf32>, vector<8x1xf32> -> vector<16x1xf32>
    %cst = arith.constant dense<0.000000e+00> : vector<16xf32>
    %21 = vector.multi_reduction <add>, %18, %cst [1] : vector<16x32xf32> to vector<16xf32>
    %22 = vector.shape_cast %21 : vector<16xf32> to vector<16x1xf32>
    %cst_32 = arith.constant 3.200000e+01 : f32
    %23 = vector.broadcast %cst_32 : f32 to vector<16x1xf32>
    %24 = arith.divf %22, %23 : vector<16x1xf32>
    %25 = vector.broadcast %24 : vector<16x1xf32> to vector<16x32xf32>
    %26 = arith.subf %18, %25 : vector<16x32xf32>
    %27 = arith.mulf %26, %26 : vector<16x32xf32>
    %cst_33 = arith.constant dense<0.000000e+00> : vector<16xf32>
    %28 = vector.multi_reduction <add>, %27, %cst_33 [1] : vector<16x32xf32> to vector<16xf32>
    %29 = vector.shape_cast %28 : vector<16xf32> to vector<16x1xf32>
    %cst_34 = arith.constant 3.200000e+01 : f32
    %30 = vector.broadcast %cst_34 : f32 to vector<16x1xf32>
    %31 = arith.divf %29, %30 : vector<16x1xf32>
    %cst_35 = arith.constant 9.99999974E-6 : f32
    %32 = vector.broadcast %cst_35 : f32 to vector<16x1xf32>
    %33 = arith.addf %31, %32 : vector<16x1xf32>
    %34 = math.sqrt %33 : vector<16x1xf32>
    %35 = vector.broadcast %24 : vector<16x1xf32> to vector<16x32xf32>
    %36 = arith.subf %18, %35 : vector<16x32xf32>
    %37 = vector.broadcast %34 : vector<16x1xf32> to vector<16x32xf32>
    %38 = arith.divf %36, %37 : vector<16x32xf32>
    %39 = vector.broadcast %19 : vector<16x1xf32> to vector<16x32xf32>
    %40 = arith.mulf %38, %39 : vector<16x32xf32>
    %41 = vector.broadcast %20 : vector<16x1xf32> to vector<16x32xf32>
    %42 = arith.addf %40, %41 : vector<16x32xf32>
    %43 = vector.extract_strided_slice %4 {offsets = [0, 0, 0], sizes = [1, 32, 128], strides = [1, 1, 1]} : vector<2x32x128xf32> to vector<1x32x128xf32>
    %44 = vector.shape_cast %43 : vector<1x32x128xf32> to vector<32x128xf32>
    %45 = vector.extract_strided_slice %5 {offsets = [0, 0, 0], sizes = [1, 1, 128], strides = [1, 1, 1]} : vector<2x1x128xf32> to vector<1x1x128xf32>
    %46 = vector.shape_cast %45 : vector<1x1x128xf32> to vector<1x128xf32>
    %47 = vector.extract_strided_slice %44 {offsets = [0, 0], sizes = [32, 96], strides = [1, 1]} : vector<32x128xf32> to vector<32x96xf32>
    %cst_36 = arith.constant dense<0.000000e+00> : vector<16x96xf32>
    %48 = tpu.matmul %42, %47, %cst_36 {dimension_numbers = #tpu.dot_dimension_numbers<[1], [0], [0], [1], [0, 0, 1, 1], [], []>} : vector<16x32xf32>, vector<32x96xf32>, vector<16x96xf32> -> vector<16x96xf32>
    %49 = vector.extract_strided_slice %46 {offsets = [0, 0], sizes = [1, 96], strides = [1, 1]} : vector<1x128xf32> to vector<1x96xf32>
    %50 = vector.broadcast %49 : vector<1x96xf32> to vector<16x96xf32>
    %51 = arith.addf %48, %50 : vector<16x96xf32>
    %52 = vector.extract_strided_slice %51 {offsets = [0, 0], sizes = [16, 32], strides = [1, 1]} : vector<16x96xf32> to vector<16x32xf32>
    %cst_37 = arith.constant 0.353553385 : f32
    %53 = vector.broadcast %cst_37 : f32 to vector<16x32xf32>
    %54 = arith.mulf %52, %53 : vector<16x32xf32>
    %55 = vector.extract_strided_slice %51 {offsets = [0, 32], sizes = [16, 32], strides = [1, 1]} : vector<16x96xf32> to vector<16x32xf32>
    %56 = vector.extract_strided_slice %51 {offsets = [0, 64], sizes = [16, 32], strides = [1, 1]} : vector<16x96xf32> to vector<16x32xf32>
    %57 = vector.extract_strided_slice %54 {offsets = [0, 0], sizes = [8, 32], strides = [1, 1]} : vector<16x32xf32> to vector<8x32xf32>
    %58 = vector.extract_strided_slice %55 {offsets = [0, 0], sizes = [8, 32], strides = [1, 1]} : vector<16x32xf32> to vector<8x32xf32>
    %59 = vector.extract_strided_slice %56 {offsets = [0, 0], sizes = [8, 32], strides = [1, 1]} : vector<16x32xf32> to vector<8x32xf32>
    %60 = vector.extract_strided_slice %57 {offsets = [0, 0], sizes = [8, 8], strides = [1, 1]} : vector<8x32xf32> to vector<8x8xf32>
    %61 = vector.extract_strided_slice %58 {offsets = [0, 0], sizes = [8, 8], strides = [1, 1]} : vector<8x32xf32> to vector<8x8xf32>
    %cst_38 = arith.constant dense<0.000000e+00> : vector<8x8xf32>
    %62 = tpu.matmul %60, %61, %cst_38 {dimension_numbers = #tpu.dot_dimension_numbers<[1], [1], [0], [0], [0, 0, 1, 0], [], []>} : vector<8x8xf32>, vector<8x8xf32>, vector<8x8xf32> -> vector<8x8xf32>
    %cst_39 = arith.constant dense<0xFF800000> : vector<8xf32>
    %63 = vector.multi_reduction <maximumf>, %62, %cst_39 [1] : vector<8x8xf32> to vector<8xf32>
    %64 = vector.shape_cast %63 : vector<8xf32> to vector<8x1xf32>
    %65 = vector.broadcast %64 : vector<8x1xf32> to vector<8x8xf32>
    %66 = arith.subf %62, %65 : vector<8x8xf32>
    %67 = math.exp %66 : vector<8x8xf32>
    %cst_40 = arith.constant dense<0.000000e+00> : vector<8xf32>
    %68 = vector.multi_reduction <add>, %67, %cst_40 [1] : vector<8x8xf32> to vector<8xf32>
    %69 = vector.shape_cast %68 : vector<8xf32> to vector<8x1xf32>
    %70 = tpu.reciprocal %69 {approx = true} : vector<8x1xf32> -> vector<8x1xf32>
    %71 = vector.broadcast %70 : vector<8x1xf32> to vector<8x8xf32>
    %72 = arith.mulf %67, %71 : vector<8x8xf32>
    %73 = vector.extract_strided_slice %59 {offsets = [0, 0], sizes = [8, 8], strides = [1, 1]} : vector<8x32xf32> to vector<8x8xf32>
    %cst_41 = arith.constant dense<0.000000e+00> : vector<8x8xf32>
    %74 = tpu.matmul %72, %73, %cst_41 {dimension_numbers = #tpu.dot_dimension_numbers<[1], [0], [0], [1], [0, 0, 1, 1], [], []>} : vector<8x8xf32>, vector<8x8xf32>, vector<8x8xf32> -> vector<8x8xf32>
    %75 = vector.extract_strided_slice %57 {offsets = [0, 8], sizes = [8, 8], strides = [1, 1]} : vector<8x32xf32> to vector<8x8xf32>
    %76 = vector.extract_strided_slice %58 {offsets = [0, 8], sizes = [8, 8], strides = [1, 1]} : vector<8x32xf32> to vector<8x8xf32>
    %cst_42 = arith.constant dense<0.000000e+00> : vector<8x8xf32>
    %77 = tpu.matmul %75, %76, %cst_42 {dimension_numbers = #tpu.dot_dimension_numbers<[1], [1], [0], [0], [0, 0, 1, 0], [], []>} : vector<8x8xf32>, vector<8x8xf32>, vector<8x8xf32> -> vector<8x8xf32>
    %cst_43 = arith.constant dense<0xFF800000> : vector<8xf32>
    %78 = vector.multi_reduction <maximumf>, %77, %cst_43 [1] : vector<8x8xf32> to vector<8xf32>
    %79 = vector.shape_cast %78 : vector<8xf32> to vector<8x1xf32>
    %80 = vector.broadcast %79 : vector<8x1xf32> to vector<8x8xf32>
    %81 = arith.subf %77, %80 : vector<8x8xf32>
    %82 = math.exp %81 : vector<8x8xf32>
    %cst_44 = arith.constant dense<0.000000e+00> : vector<8xf32>
    %83 = vector.multi_reduction <add>, %82, %cst_44 [1] : vector<8x8xf32> to vector<8xf32>
    %84 = vector.shape_cast %83 : vector<8xf32> to vector<8x1xf32>
    %85 = tpu.reciprocal %84 {approx = true} : vector<8x1xf32> -> vector<8x1xf32>
    %86 = vector.broadcast %85 : vector<8x1xf32> to vector<8x8xf32>
    %87 = arith.mulf %82, %86 : vector<8x8xf32>
    %88 = vector.extract_strided_slice %59 {offsets = [0, 8], sizes = [8, 8], strides = [1, 1]} : vector<8x32xf32> to vector<8x8xf32>
    %cst_45 = arith.constant dense<0.000000e+00> : vector<8x8xf32>
    %89 = tpu.matmul %87, %88, %cst_45 {dimension_numbers = #tpu.dot_dimension_numbers<[1], [0], [0], [1], [0, 0, 1, 1], [], []>} : vector<8x8xf32>, vector<8x8xf32>, vector<8x8xf32> -> vector<8x8xf32>
    %90 = vector.extract_strided_slice %57 {offsets = [0, 16], sizes = [8, 8], strides = [1, 1]} : vector<8x32xf32> to vector<8x8xf32>
    %91 = vector.extract_strided_slice %58 {offsets = [0, 16], sizes = [8, 8], strides = [1, 1]} : vector<8x32xf32> to vector<8x8xf32>
    %cst_46 = arith.constant dense<0.000000e+00> : vector<8x8xf32>
    %92 = tpu.matmul %90, %91, %cst_46 {dimension_numbers = #tpu.dot_dimension_numbers<[1], [1], [0], [0], [0, 0, 1, 0], [], []>} : vector<8x8xf32>, vector<8x8xf32>, vector<8x8xf32> -> vector<8x8xf32>
    %cst_47 = arith.constant dense<0xFF800000> : vector<8xf32>
    %93 = vector.multi_reduction <maximumf>, %92, %cst_47 [1] : vector<8x8xf32> to vector<8xf32>
    %94 = vector.shape_cast %93 : vector<8xf32> to vector<8x1xf32>
    %95 = vector.broadcast %94 : vector<8x1xf32> to vector<8x8xf32>
    %96 = arith.subf %92, %95 : vector<8x8xf32>
    %97 = math.exp %96 : vector<8x8xf32>
    %cst_48 = arith.constant dense<0.000000e+00> : vector<8xf32>
    %98 = vector.multi_reduction <add>, %97, %cst_48 [1] : vector<8x8xf32> to vector<8xf32>
    %99 = vector.shape_cast %98 : vector<8xf32> to vector<8x1xf32>
    %100 = tpu.reciprocal %99 {approx = true} : vector<8x1xf32> -> vector<8x1xf32>
    %101 = vector.broadcast %100 : vector<8x1xf32> to vector<8x8xf32>
    %102 = arith.mulf %97, %101 : vector<8x8xf32>
    %103 = vector.extract_strided_slice %59 {offsets = [0, 16], sizes = [8, 8], strides = [1, 1]} : vector<8x32xf32> to vector<8x8xf32>
    %cst_49 = arith.constant dense<0.000000e+00> : vector<8x8xf32>
    %104 = tpu.matmul %102, %103, %cst_49 {dimension_numbers = #tpu.dot_dimension_numbers<[1], [0], [0], [1], [0, 0, 1, 1], [], []>} : vector<8x8xf32>, vector<8x8xf32>, vector<8x8xf32> -> vector<8x8xf32>
    %105 = vector.extract_strided_slice %57 {offsets = [0, 24], sizes = [8, 8], strides = [1, 1]} : vector<8x32xf32> to vector<8x8xf32>
    %106 = vector.extract_strided_slice %58 {offsets = [0, 24], sizes = [8, 8], strides = [1, 1]} : vector<8x32xf32> to vector<8x8xf32>
    %cst_50 = arith.constant dense<0.000000e+00> : vector<8x8xf32>
    %107 = tpu.matmul %105, %106, %cst_50 {dimension_numbers = #tpu.dot_dimension_numbers<[1], [1], [0], [0], [0, 0, 1, 0], [], []>} : vector<8x8xf32>, vector<8x8xf32>, vector<8x8xf32> -> vector<8x8xf32>
    %cst_51 = arith.constant dense<0xFF800000> : vector<8xf32>
    %108 = vector.multi_reduction <maximumf>, %107, %cst_51 [1] : vector<8x8xf32> to vector<8xf32>
    %109 = vector.shape_cast %108 : vector<8xf32> to vector<8x1xf32>
    %110 = vector.broadcast %109 : vector<8x1xf32> to vector<8x8xf32>
    %111 = arith.subf %107, %110 : vector<8x8xf32>
    %112 = math.exp %111 : vector<8x8xf32>
    %cst_52 = arith.constant dense<0.000000e+00> : vector<8xf32>
    %113 = vector.multi_reduction <add>, %112, %cst_52 [1] : vector<8x8xf32> to vector<8xf32>
    %114 = vector.shape_cast %113 : vector<8xf32> to vector<8x1xf32>
    %115 = tpu.reciprocal %114 {approx = true} : vector<8x1xf32> -> vector<8x1xf32>
    %116 = vector.broadcast %115 : vector<8x1xf32> to vector<8x8xf32>
    %117 = arith.mulf %112, %116 : vector<8x8xf32>
    %118 = vector.extract_strided_slice %59 {offsets = [0, 24], sizes = [8, 8], strides = [1, 1]} : vector<8x32xf32> to vector<8x8xf32>
    %cst_53 = arith.constant dense<0.000000e+00> : vector<8x8xf32>
    %119 = tpu.matmul %117, %118, %cst_53 {dimension_numbers = #tpu.dot_dimension_numbers<[1], [0], [0], [1], [0, 0, 1, 1], [], []>} : vector<8x8xf32>, vector<8x8xf32>, vector<8x8xf32> -> vector<8x8xf32>
    %120 = tpu.concatenate %74, %89, %104, %119 in 1 : vector<8x8xf32>, vector<8x8xf32>, vector<8x8xf32>, vector<8x8xf32> -> vector<8x32xf32>
    %121 = vector.extract_strided_slice %54 {offsets = [8, 0], sizes = [8, 32], strides = [1, 1]} : vector<16x32xf32> to vector<8x32xf32>
    %122 = vector.extract_strided_slice %55 {offsets = [8, 0], sizes = [8, 32], strides = [1, 1]} : vector<16x32xf32> to vector<8x32xf32>
    %123 = vector.extract_strided_slice %56 {offsets = [8, 0], sizes = [8, 32], strides = [1, 1]} : vector<16x32xf32> to vector<8x32xf32>
    %124 = vector.extract_strided_slice %121 {offsets = [0, 0], sizes = [8, 8], strides = [1, 1]} : vector<8x32xf32> to vector<8x8xf32>
    %125 = vector.extract_strided_slice %122 {offsets = [0, 0], sizes = [8, 8], strides = [1, 1]} : vector<8x32xf32> to vector<8x8xf32>
    %cst_54 = arith.constant dense<0.000000e+00> : vector<8x8xf32>
    %126 = tpu.matmul %124, %125, %cst_54 {dimension_numbers = #tpu.dot_dimension_numbers<[1], [1], [0], [0], [0, 0, 1, 0], [], []>} : vector<8x8xf32>, vector<8x8xf32>, vector<8x8xf32> -> vector<8x8xf32>
    %cst_55 = arith.constant dense<0xFF800000> : vector<8xf32>
    %127 = vector.multi_reduction <maximumf>, %126, %cst_55 [1] : vector<8x8xf32> to vector<8xf32>
    %128 = vector.shape_cast %127 : vector<8xf32> to vector<8x1xf32>
    %129 = vector.broadcast %128 : vector<8x1xf32> to vector<8x8xf32>
    %130 = arith.subf %126, %129 : vector<8x8xf32>
    %131 = math.exp %130 : vector<8x8xf32>
    %cst_56 = arith.constant dense<0.000000e+00> : vector<8xf32>
    %132 = vector.multi_reduction <add>, %131, %cst_56 [1] : vector<8x8xf32> to vector<8xf32>
    %133 = vector.shape_cast %132 : vector<8xf32> to vector<8x1xf32>
    %134 = tpu.reciprocal %133 {approx = true} : vector<8x1xf32> -> vector<8x1xf32>
    %135 = vector.broadcast %134 : vector<8x1xf32> to vector<8x8xf32>
    %136 = arith.mulf %131, %135 : vector<8x8xf32>
    %137 = vector.extract_strided_slice %123 {offsets = [0, 0], sizes = [8, 8], strides = [1, 1]} : vector<8x32xf32> to vector<8x8xf32>
    %cst_57 = arith.constant dense<0.000000e+00> : vector<8x8xf32>
    %138 = tpu.matmul %136, %137, %cst_57 {dimension_numbers = #tpu.dot_dimension_numbers<[1], [0], [0], [1], [0, 0, 1, 1], [], []>} : vector<8x8xf32>, vector<8x8xf32>, vector<8x8xf32> -> vector<8x8xf32>
    %139 = vector.extract_strided_slice %121 {offsets = [0, 8], sizes = [8, 8], strides = [1, 1]} : vector<8x32xf32> to vector<8x8xf32>
    %140 = vector.extract_strided_slice %122 {offsets = [0, 8], sizes = [8, 8], strides = [1, 1]} : vector<8x32xf32> to vector<8x8xf32>
    %cst_58 = arith.constant dense<0.000000e+00> : vector<8x8xf32>
    %141 = tpu.matmul %139, %140, %cst_58 {dimension_numbers = #tpu.dot_dimension_numbers<[1], [1], [0], [0], [0, 0, 1, 0], [], []>} : vector<8x8xf32>, vector<8x8xf32>, vector<8x8xf32> -> vector<8x8xf32>
    %cst_59 = arith.constant dense<0xFF800000> : vector<8xf32>
    %142 = vector.multi_reduction <maximumf>, %141, %cst_59 [1] : vector<8x8xf32> to vector<8xf32>
    %143 = vector.shape_cast %142 : vector<8xf32> to vector<8x1xf32>
    %144 = vector.broadcast %143 : vector<8x1xf32> to vector<8x8xf32>
    %145 = arith.subf %141, %144 : vector<8x8xf32>
    %146 = math.exp %145 : vector<8x8xf32>
    %cst_60 = arith.constant dense<0.000000e+00> : vector<8xf32>
    %147 = vector.multi_reduction <add>, %146, %cst_60 [1] : vector<8x8xf32> to vector<8xf32>
    %148 = vector.shape_cast %147 : vector<8xf32> to vector<8x1xf32>
    %149 = tpu.reciprocal %148 {approx = true} : vector<8x1xf32> -> vector<8x1xf32>
    %150 = vector.broadcast %149 : vector<8x1xf32> to vector<8x8xf32>
    %151 = arith.mulf %146, %150 : vector<8x8xf32>
    %152 = vector.extract_strided_slice %123 {offsets = [0, 8], sizes = [8, 8], strides = [1, 1]} : vector<8x32xf32> to vector<8x8xf32>
    %cst_61 = arith.constant dense<0.000000e+00> : vector<8x8xf32>
    %153 = tpu.matmul %151, %152, %cst_61 {dimension_numbers = #tpu.dot_dimension_numbers<[1], [0], [0], [1], [0, 0, 1, 1], [], []>} : vector<8x8xf32>, vector<8x8xf32>, vector<8x8xf32> -> vector<8x8xf32>
    %154 = vector.extract_strided_slice %121 {offsets = [0, 16], sizes = [8, 8], strides = [1, 1]} : vector<8x32xf32> to vector<8x8xf32>
    %155 = vector.extract_strided_slice %122 {offsets = [0, 16], sizes = [8, 8], strides = [1, 1]} : vector<8x32xf32> to vector<8x8xf32>
    %cst_62 = arith.constant dense<0.000000e+00> : vector<8x8xf32>
    %156 = tpu.matmul %154, %155, %cst_62 {dimension_numbers = #tpu.dot_dimension_numbers<[1], [1], [0], [0], [0, 0, 1, 0], [], []>} : vector<8x8xf32>, vector<8x8xf32>, vector<8x8xf32> -> vector<8x8xf32>
    %cst_63 = arith.constant dense<0xFF800000> : vector<8xf32>
    %157 = vector.multi_reduction <maximumf>, %156, %cst_63 [1] : vector<8x8xf32> to vector<8xf32>
    %158 = vector.shape_cast %157 : vector<8xf32> to vector<8x1xf32>
    %159 = vector.broadcast %158 : vector<8x1xf32> to vector<8x8xf32>
    %160 = arith.subf %156, %159 : vector<8x8xf32>
    %161 = math.exp %160 : vector<8x8xf32>
    %cst_64 = arith.constant dense<0.000000e+00> : vector<8xf32>
    %162 = vector.multi_reduction <add>, %161, %cst_64 [1] : vector<8x8xf32> to vector<8xf32>
    %163 = vector.shape_cast %162 : vector<8xf32> to vector<8x1xf32>
    %164 = tpu.reciprocal %163 {approx = true} : vector<8x1xf32> -> vector<8x1xf32>
    %165 = vector.broadcast %164 : vector<8x1xf32> to vector<8x8xf32>
    %166 = arith.mulf %161, %165 : vector<8x8xf32>
    %167 = vector.extract_strided_slice %123 {offsets = [0, 16], sizes = [8, 8], strides = [1, 1]} : vector<8x32xf32> to vector<8x8xf32>
    %cst_65 = arith.constant dense<0.000000e+00> : vector<8x8xf32>
    %168 = tpu.matmul %166, %167, %cst_65 {dimension_numbers = #tpu.dot_dimension_numbers<[1], [0], [0], [1], [0, 0, 1, 1], [], []>} : vector<8x8xf32>, vector<8x8xf32>, vector<8x8xf32> -> vector<8x8xf32>
    %169 = vector.extract_strided_slice %121 {offsets = [0, 24], sizes = [8, 8], strides = [1, 1]} : vector<8x32xf32> to vector<8x8xf32>
    %170 = vector.extract_strided_slice %122 {offsets = [0, 24], sizes = [8, 8], strides = [1, 1]} : vector<8x32xf32> to vector<8x8xf32>
    %cst_66 = arith.constant dense<0.000000e+00> : vector<8x8xf32>
    %171 = tpu.matmul %169, %170, %cst_66 {dimension_numbers = #tpu.dot_dimension_numbers<[1], [1], [0], [0], [0, 0, 1, 0], [], []>} : vector<8x8xf32>, vector<8x8xf32>, vector<8x8xf32> -> vector<8x8xf32>
    %cst_67 = arith.constant dense<0xFF800000> : vector<8xf32>
    %172 = vector.multi_reduction <maximumf>, %171, %cst_67 [1] : vector<8x8xf32> to vector<8xf32>
    %173 = vector.shape_cast %172 : vector<8xf32> to vector<8x1xf32>
    %174 = vector.broadcast %173 : vector<8x1xf32> to vector<8x8xf32>
    %175 = arith.subf %171, %174 : vector<8x8xf32>
    %176 = math.exp %175 : vector<8x8xf32>
    %cst_68 = arith.constant dense<0.000000e+00> : vector<8xf32>
    %177 = vector.multi_reduction <add>, %176, %cst_68 [1] : vector<8x8xf32> to vector<8xf32>
    %178 = vector.shape_cast %177 : vector<8xf32> to vector<8x1xf32>
    %179 = tpu.reciprocal %178 {approx = true} : vector<8x1xf32> -> vector<8x1xf32>
    %180 = vector.broadcast %179 : vector<8x1xf32> to vector<8x8xf32>
    %181 = arith.mulf %176, %180 : vector<8x8xf32>
    %182 = vector.extract_strided_slice %123 {offsets = [0, 24], sizes = [8, 8], strides = [1, 1]} : vector<8x32xf32> to vector<8x8xf32>
    %cst_69 = arith.constant dense<0.000000e+00> : vector<8x8xf32>
    %183 = tpu.matmul %181, %182, %cst_69 {dimension_numbers = #tpu.dot_dimension_numbers<[1], [0], [0], [1], [0, 0, 1, 1], [], []>} : vector<8x8xf32>, vector<8x8xf32>, vector<8x8xf32> -> vector<8x8xf32>
    %184 = tpu.concatenate %138, %153, %168, %183 in 1 : vector<8x8xf32>, vector<8x8xf32>, vector<8x8xf32>, vector<8x8xf32> -> vector<8x32xf32>
    %185 = tpu.concatenate %120, %184 in 0 : vector<8x32xf32>, vector<8x32xf32> -> vector<16x32xf32>
    %186 = vector.extract_strided_slice %44 {offsets = [0, 96], sizes = [32, 32], strides = [1, 1]} : vector<32x128xf32> to vector<32x32xf32>
    %cst_70 = arith.constant dense<0.000000e+00> : vector<16x32xf32>
    %187 = tpu.matmul %185, %186, %cst_70 {dimension_numbers = #tpu.dot_dimension_numbers<[1], [0], [0], [1], [0, 0, 1, 1], [], []>} : vector<16x32xf32>, vector<32x32xf32>, vector<16x32xf32> -> vector<16x32xf32>
    %188 = vector.extract_strided_slice %46 {offsets = [0, 96], sizes = [1, 32], strides = [1, 1]} : vector<1x128xf32> to vector<1x32xf32>
    %189 = vector.broadcast %188 : vector<1x32xf32> to vector<16x32xf32>
    %190 = arith.addf %187, %189 : vector<16x32xf32>
    %191 = arith.addf %42, %190 : vector<16x32xf32>
    %192 = vector.extract_strided_slice %6 {offsets = [0, 0], sizes = [1, 32], strides = [1, 1]} : vector<5x32xf32> to vector<1x32xf32>
    %193 = vector.extract_strided_slice %7 {offsets = [0, 0], sizes = [1, 32], strides = [1, 1]} : vector<5x32xf32> to vector<1x32xf32>
    %cst_71 = arith.constant dense<0.000000e+00> : vector<16xf32>
    %194 = vector.multi_reduction <add>, %191, %cst_71 [1] : vector<16x32xf32> to vector<16xf32>
    %195 = vector.shape_cast %194 : vector<16xf32> to vector<16x1xf32>
    %cst_72 = arith.constant 3.200000e+01 : f32
    %196 = vector.broadcast %cst_72 : f32 to vector<16x1xf32>
    %197 = arith.divf %195, %196 : vector<16x1xf32>
    %198 = vector.broadcast %197 : vector<16x1xf32> to vector<16x32xf32>
    %199 = arith.subf %191, %198 : vector<16x32xf32>
    %200 = arith.mulf %199, %199 : vector<16x32xf32>
    %cst_73 = arith.constant dense<0.000000e+00> : vector<16xf32>
    %201 = vector.multi_reduction <add>, %200, %cst_73 [1] : vector<16x32xf32> to vector<16xf32>
    %202 = vector.shape_cast %201 : vector<16xf32> to vector<16x1xf32>
    %cst_74 = arith.constant 3.200000e+01 : f32
    %203 = vector.broadcast %cst_74 : f32 to vector<16x1xf32>
    %204 = arith.divf %202, %203 : vector<16x1xf32>
    %205 = vector.broadcast %197 : vector<16x1xf32> to vector<16x32xf32>
    %206 = arith.subf %191, %205 : vector<16x32xf32>
    %cst_75 = arith.constant 9.99999974E-6 : f32
    %207 = vector.broadcast %cst_75 : f32 to vector<16x1xf32>
    %208 = arith.addf %204, %207 : vector<16x1xf32>
    %209 = math.rsqrt %208 : vector<16x1xf32>
    %210 = vector.broadcast %209 : vector<16x1xf32> to vector<16x32xf32>
    %211 = arith.mulf %206, %210 : vector<16x32xf32>
    %212 = vector.broadcast %192 : vector<1x32xf32> to vector<16x32xf32>
    %213 = arith.mulf %211, %212 : vector<16x32xf32>
    %214 = vector.broadcast %193 : vector<1x32xf32> to vector<16x32xf32>
    %215 = arith.addf %213, %214 : vector<16x32xf32>
    %216 = vector.extract_strided_slice %8 {offsets = [0, 0, 0], sizes = [1, 32, 64], strides = [1, 1, 1]} : vector<2x32x64xf32> to vector<1x32x64xf32>
    %217 = vector.shape_cast %216 : vector<1x32x64xf32> to vector<32x64xf32>
    %cst_76 = arith.constant dense<0.000000e+00> : vector<16x64xf32>
    %218 = tpu.matmul %215, %217, %cst_76 {dimension_numbers = #tpu.dot_dimension_numbers<[1], [0], [0], [1], [0, 0, 1, 1], [], []>} : vector<16x32xf32>, vector<32x64xf32>, vector<16x64xf32> -> vector<16x64xf32>
    %219 = vector.extract_strided_slice %9 {offsets = [0, 0, 0], sizes = [1, 1, 64], strides = [1, 1, 1]} : vector<2x1x64xf32> to vector<1x1x64xf32>
    %220 = vector.shape_cast %219 : vector<1x1x64xf32> to vector<1x64xf32>
    %221 = vector.broadcast %220 : vector<1x64xf32> to vector<16x64xf32>
    %222 = arith.addf %218, %221 : vector<16x64xf32>
    %cst_77 = arith.constant 0.000000e+00 : f32
    %223 = vector.broadcast %cst_77 : f32 to vector<16x64xf32>
    %224 = arith.maximumf %222, %223 : vector<16x64xf32>
    %225 = vector.extract_strided_slice %10 {offsets = [0, 0, 0], sizes = [1, 64, 32], strides = [1, 1, 1]} : vector<2x64x32xf32> to vector<1x64x32xf32>
    %226 = vector.shape_cast %225 : vector<1x64x32xf32> to vector<64x32xf32>
    %cst_78 = arith.constant dense<0.000000e+00> : vector<16x32xf32>
    %227 = tpu.matmul %224, %226, %cst_78 {dimension_numbers = #tpu.dot_dimension_numbers<[1], [0], [0], [1], [0, 0, 1, 1], [], []>} : vector<16x64xf32>, vector<64x32xf32>, vector<16x32xf32> -> vector<16x32xf32>
    %228 = vector.extract_strided_slice %11 {offsets = [0, 0, 0], sizes = [1, 1, 32], strides = [1, 1, 1]} : vector<2x1x32xf32> to vector<1x1x32xf32>
    %229 = vector.shape_cast %228 : vector<1x1x32xf32> to vector<1x32xf32>
    %230 = vector.broadcast %229 : vector<1x32xf32> to vector<16x32xf32>
    %231 = arith.addf %227, %230 : vector<16x32xf32>
    %232 = arith.addf %215, %231 : vector<16x32xf32>
    %233 = vector.extract_strided_slice %6 {offsets = [1, 0], sizes = [1, 32], strides = [1, 1]} : vector<5x32xf32> to vector<1x32xf32>
    %234 = vector.extract_strided_slice %7 {offsets = [1, 0], sizes = [1, 32], strides = [1, 1]} : vector<5x32xf32> to vector<1x32xf32>
    %cst_79 = arith.constant dense<0.000000e+00> : vector<16xf32>
    %235 = vector.multi_reduction <add>, %232, %cst_79 [1] : vector<16x32xf32> to vector<16xf32>
    %236 = vector.shape_cast %235 : vector<16xf32> to vector<16x1xf32>
    %cst_80 = arith.constant 3.200000e+01 : f32
    %237 = vector.broadcast %cst_80 : f32 to vector<16x1xf32>
    %238 = arith.divf %236, %237 : vector<16x1xf32>
    %239 = vector.broadcast %238 : vector<16x1xf32> to vector<16x32xf32>
    %240 = arith.subf %232, %239 : vector<16x32xf32>
    %241 = arith.mulf %240, %240 : vector<16x32xf32>
    %cst_81 = arith.constant dense<0.000000e+00> : vector<16xf32>
    %242 = vector.multi_reduction <add>, %241, %cst_81 [1] : vector<16x32xf32> to vector<16xf32>
    %243 = vector.shape_cast %242 : vector<16xf32> to vector<16x1xf32>
    %cst_82 = arith.constant 3.200000e+01 : f32
    %244 = vector.broadcast %cst_82 : f32 to vector<16x1xf32>
    %245 = arith.divf %243, %244 : vector<16x1xf32>
    %246 = vector.broadcast %238 : vector<16x1xf32> to vector<16x32xf32>
    %247 = arith.subf %232, %246 : vector<16x32xf32>
    %cst_83 = arith.constant 9.99999974E-6 : f32
    %248 = vector.broadcast %cst_83 : f32 to vector<16x1xf32>
    %249 = arith.addf %245, %248 : vector<16x1xf32>
    %250 = math.rsqrt %249 : vector<16x1xf32>
    %251 = vector.broadcast %250 : vector<16x1xf32> to vector<16x32xf32>
    %252 = arith.mulf %247, %251 : vector<16x32xf32>
    %253 = vector.broadcast %233 : vector<1x32xf32> to vector<16x32xf32>
    %254 = arith.mulf %252, %253 : vector<16x32xf32>
    %255 = vector.broadcast %234 : vector<1x32xf32> to vector<16x32xf32>
    %256 = arith.addf %254, %255 : vector<16x32xf32>
    %257 = vector.extract_strided_slice %4 {offsets = [1, 0, 0], sizes = [1, 32, 128], strides = [1, 1, 1]} : vector<2x32x128xf32> to vector<1x32x128xf32>
    %258 = vector.shape_cast %257 : vector<1x32x128xf32> to vector<32x128xf32>
    %259 = vector.extract_strided_slice %5 {offsets = [1, 0, 0], sizes = [1, 1, 128], strides = [1, 1, 1]} : vector<2x1x128xf32> to vector<1x1x128xf32>
    %260 = vector.shape_cast %259 : vector<1x1x128xf32> to vector<1x128xf32>
    %261 = vector.extract_strided_slice %258 {offsets = [0, 0], sizes = [32, 96], strides = [1, 1]} : vector<32x128xf32> to vector<32x96xf32>
    %cst_84 = arith.constant dense<0.000000e+00> : vector<16x96xf32>
    %262 = tpu.matmul %256, %261, %cst_84 {dimension_numbers = #tpu.dot_dimension_numbers<[1], [0], [0], [1], [0, 0, 1, 1], [], []>} : vector<16x32xf32>, vector<32x96xf32>, vector<16x96xf32> -> vector<16x96xf32>
    %263 = vector.extract_strided_slice %260 {offsets = [0, 0], sizes = [1, 96], strides = [1, 1]} : vector<1x128xf32> to vector<1x96xf32>
    %264 = vector.broadcast %263 : vector<1x96xf32> to vector<16x96xf32>
    %265 = arith.addf %262, %264 : vector<16x96xf32>
    %266 = vector.extract_strided_slice %265 {offsets = [0, 0], sizes = [16, 32], strides = [1, 1]} : vector<16x96xf32> to vector<16x32xf32>
    %cst_85 = arith.constant 0.353553385 : f32
    %267 = vector.broadcast %cst_85 : f32 to vector<16x32xf32>
    %268 = arith.mulf %266, %267 : vector<16x32xf32>
    %269 = vector.extract_strided_slice %265 {offsets = [0, 32], sizes = [16, 32], strides = [1, 1]} : vector<16x96xf32> to vector<16x32xf32>
    %270 = vector.extract_strided_slice %265 {offsets = [0, 64], sizes = [16, 32], strides = [1, 1]} : vector<16x96xf32> to vector<16x32xf32>
    %271 = vector.extract_strided_slice %268 {offsets = [0, 0], sizes = [8, 32], strides = [1, 1]} : vector<16x32xf32> to vector<8x32xf32>
    %272 = vector.extract_strided_slice %269 {offsets = [0, 0], sizes = [8, 32], strides = [1, 1]} : vector<16x32xf32> to vector<8x32xf32>
    %273 = vector.extract_strided_slice %270 {offsets = [0, 0], sizes = [8, 32], strides = [1, 1]} : vector<16x32xf32> to vector<8x32xf32>
    %274 = vector.extract_strided_slice %271 {offsets = [0, 0], sizes = [8, 8], strides = [1, 1]} : vector<8x32xf32> to vector<8x8xf32>
    %275 = vector.extract_strided_slice %272 {offsets = [0, 0], sizes = [8, 8], strides = [1, 1]} : vector<8x32xf32> to vector<8x8xf32>
    %cst_86 = arith.constant dense<0.000000e+00> : vector<8x8xf32>
    %276 = tpu.matmul %274, %275, %cst_86 {dimension_numbers = #tpu.dot_dimension_numbers<[1], [1], [0], [0], [0, 0, 1, 0], [], []>} : vector<8x8xf32>, vector<8x8xf32>, vector<8x8xf32> -> vector<8x8xf32>
    %cst_87 = arith.constant dense<0xFF800000> : vector<8xf32>
    %277 = vector.multi_reduction <maximumf>, %276, %cst_87 [1] : vector<8x8xf32> to vector<8xf32>
    %278 = vector.shape_cast %277 : vector<8xf32> to vector<8x1xf32>
    %279 = vector.broadcast %278 : vector<8x1xf32> to vector<8x8xf32>
    %280 = arith.subf %276, %279 : vector<8x8xf32>
    %281 = math.exp %280 : vector<8x8xf32>
    %cst_88 = arith.constant dense<0.000000e+00> : vector<8xf32>
    %282 = vector.multi_reduction <add>, %281, %cst_88 [1] : vector<8x8xf32> to vector<8xf32>
    %283 = vector.shape_cast %282 : vector<8xf32> to vector<8x1xf32>
    %284 = tpu.reciprocal %283 {approx = true} : vector<8x1xf32> -> vector<8x1xf32>
    %285 = vector.broadcast %284 : vector<8x1xf32> to vector<8x8xf32>
    %286 = arith.mulf %281, %285 : vector<8x8xf32>
    %287 = vector.extract_strided_slice %273 {offsets = [0, 0], sizes = [8, 8], strides = [1, 1]} : vector<8x32xf32> to vector<8x8xf32>
    %cst_89 = arith.constant dense<0.000000e+00> : vector<8x8xf32>
    %288 = tpu.matmul %286, %287, %cst_89 {dimension_numbers = #tpu.dot_dimension_numbers<[1], [0], [0], [1], [0, 0, 1, 1], [], []>} : vector<8x8xf32>, vector<8x8xf32>, vector<8x8xf32> -> vector<8x8xf32>
    %289 = vector.extract_strided_slice %271 {offsets = [0, 8], sizes = [8, 8], strides = [1, 1]} : vector<8x32xf32> to vector<8x8xf32>
    %290 = vector.extract_strided_slice %272 {offsets = [0, 8], sizes = [8, 8], strides = [1, 1]} : vector<8x32xf32> to vector<8x8xf32>
    %cst_90 = arith.constant dense<0.000000e+00> : vector<8x8xf32>
    %291 = tpu.matmul %289, %290, %cst_90 {dimension_numbers = #tpu.dot_dimension_numbers<[1], [1], [0], [0], [0, 0, 1, 0], [], []>} : vector<8x8xf32>, vector<8x8xf32>, vector<8x8xf32> -> vector<8x8xf32>
    %cst_91 = arith.constant dense<0xFF800000> : vector<8xf32>
    %292 = vector.multi_reduction <maximumf>, %291, %cst_91 [1] : vector<8x8xf32> to vector<8xf32>
    %293 = vector.shape_cast %292 : vector<8xf32> to vector<8x1xf32>
    %294 = vector.broadcast %293 : vector<8x1xf32> to vector<8x8xf32>
    %295 = arith.subf %291, %294 : vector<8x8xf32>
    %296 = math.exp %295 : vector<8x8xf32>
    %cst_92 = arith.constant dense<0.000000e+00> : vector<8xf32>
    %297 = vector.multi_reduction <add>, %296, %cst_92 [1] : vector<8x8xf32> to vector<8xf32>
    %298 = vector.shape_cast %297 : vector<8xf32> to vector<8x1xf32>
    %299 = tpu.reciprocal %298 {approx = true} : vector<8x1xf32> -> vector<8x1xf32>
    %300 = vector.broadcast %299 : vector<8x1xf32> to vector<8x8xf32>
    %301 = arith.mulf %296, %300 : vector<8x8xf32>
    %302 = vector.extract_strided_slice %273 {offsets = [0, 8], sizes = [8, 8], strides = [1, 1]} : vector<8x32xf32> to vector<8x8xf32>
    %cst_93 = arith.constant dense<0.000000e+00> : vector<8x8xf32>
    %303 = tpu.matmul %301, %302, %cst_93 {dimension_numbers = #tpu.dot_dimension_numbers<[1], [0], [0], [1], [0, 0, 1, 1], [], []>} : vector<8x8xf32>, vector<8x8xf32>, vector<8x8xf32> -> vector<8x8xf32>
    %304 = vector.extract_strided_slice %271 {offsets = [0, 16], sizes = [8, 8], strides = [1, 1]} : vector<8x32xf32> to vector<8x8xf32>
    %305 = vector.extract_strided_slice %272 {offsets = [0, 16], sizes = [8, 8], strides = [1, 1]} : vector<8x32xf32> to vector<8x8xf32>
    %cst_94 = arith.constant dense<0.000000e+00> : vector<8x8xf32>
    %306 = tpu.matmul %304, %305, %cst_94 {dimension_numbers = #tpu.dot_dimension_numbers<[1], [1], [0], [0], [0, 0, 1, 0], [], []>} : vector<8x8xf32>, vector<8x8xf32>, vector<8x8xf32> -> vector<8x8xf32>
    %cst_95 = arith.constant dense<0xFF800000> : vector<8xf32>
    %307 = vector.multi_reduction <maximumf>, %306, %cst_95 [1] : vector<8x8xf32> to vector<8xf32>
    %308 = vector.shape_cast %307 : vector<8xf32> to vector<8x1xf32>
    %309 = vector.broadcast %308 : vector<8x1xf32> to vector<8x8xf32>
    %310 = arith.subf %306, %309 : vector<8x8xf32>
    %311 = math.exp %310 : vector<8x8xf32>
    %cst_96 = arith.constant dense<0.000000e+00> : vector<8xf32>
    %312 = vector.multi_reduction <add>, %311, %cst_96 [1] : vector<8x8xf32> to vector<8xf32>
    %313 = vector.shape_cast %312 : vector<8xf32> to vector<8x1xf32>
    %314 = tpu.reciprocal %313 {approx = true} : vector<8x1xf32> -> vector<8x1xf32>
    %315 = vector.broadcast %314 : vector<8x1xf32> to vector<8x8xf32>
    %316 = arith.mulf %311, %315 : vector<8x8xf32>
    %317 = vector.extract_strided_slice %273 {offsets = [0, 16], sizes = [8, 8], strides = [1, 1]} : vector<8x32xf32> to vector<8x8xf32>
    %cst_97 = arith.constant dense<0.000000e+00> : vector<8x8xf32>
    %318 = tpu.matmul %316, %317, %cst_97 {dimension_numbers = #tpu.dot_dimension_numbers<[1], [0], [0], [1], [0, 0, 1, 1], [], []>} : vector<8x8xf32>, vector<8x8xf32>, vector<8x8xf32> -> vector<8x8xf32>
    %319 = vector.extract_strided_slice %271 {offsets = [0, 24], sizes = [8, 8], strides = [1, 1]} : vector<8x32xf32> to vector<8x8xf32>
    %320 = vector.extract_strided_slice %272 {offsets = [0, 24], sizes = [8, 8], strides = [1, 1]} : vector<8x32xf32> to vector<8x8xf32>
    %cst_98 = arith.constant dense<0.000000e+00> : vector<8x8xf32>
    %321 = tpu.matmul %319, %320, %cst_98 {dimension_numbers = #tpu.dot_dimension_numbers<[1], [1], [0], [0], [0, 0, 1, 0], [], []>} : vector<8x8xf32>, vector<8x8xf32>, vector<8x8xf32> -> vector<8x8xf32>
    %cst_99 = arith.constant dense<0xFF800000> : vector<8xf32>
    %322 = vector.multi_reduction <maximumf>, %321, %cst_99 [1] : vector<8x8xf32> to vector<8xf32>
    %323 = vector.shape_cast %322 : vector<8xf32> to vector<8x1xf32>
    %324 = vector.broadcast %323 : vector<8x1xf32> to vector<8x8xf32>
    %325 = arith.subf %321, %324 : vector<8x8xf32>
    %326 = math.exp %325 : vector<8x8xf32>
    %cst_100 = arith.constant dense<0.000000e+00> : vector<8xf32>
    %327 = vector.multi_reduction <add>, %326, %cst_100 [1] : vector<8x8xf32> to vector<8xf32>
    %328 = vector.shape_cast %327 : vector<8xf32> to vector<8x1xf32>
    %329 = tpu.reciprocal %328 {approx = true} : vector<8x1xf32> -> vector<8x1xf32>
    %330 = vector.broadcast %329 : vector<8x1xf32> to vector<8x8xf32>
    %331 = arith.mulf %326, %330 : vector<8x8xf32>
    %332 = vector.extract_strided_slice %273 {offsets = [0, 24], sizes = [8, 8], strides = [1, 1]} : vector<8x32xf32> to vector<8x8xf32>
    %cst_101 = arith.constant dense<0.000000e+00> : vector<8x8xf32>
    %333 = tpu.matmul %331, %332, %cst_101 {dimension_numbers = #tpu.dot_dimension_numbers<[1], [0], [0], [1], [0, 0, 1, 1], [], []>} : vector<8x8xf32>, vector<8x8xf32>, vector<8x8xf32> -> vector<8x8xf32>
    %334 = tpu.concatenate %288, %303, %318, %333 in 1 : vector<8x8xf32>, vector<8x8xf32>, vector<8x8xf32>, vector<8x8xf32> -> vector<8x32xf32>
    %335 = vector.extract_strided_slice %268 {offsets = [8, 0], sizes = [8, 32], strides = [1, 1]} : vector<16x32xf32> to vector<8x32xf32>
    %336 = vector.extract_strided_slice %269 {offsets = [8, 0], sizes = [8, 32], strides = [1, 1]} : vector<16x32xf32> to vector<8x32xf32>
    %337 = vector.extract_strided_slice %270 {offsets = [8, 0], sizes = [8, 32], strides = [1, 1]} : vector<16x32xf32> to vector<8x32xf32>
    %338 = vector.extract_strided_slice %335 {offsets = [0, 0], sizes = [8, 8], strides = [1, 1]} : vector<8x32xf32> to vector<8x8xf32>
    %339 = vector.extract_strided_slice %336 {offsets = [0, 0], sizes = [8, 8], strides = [1, 1]} : vector<8x32xf32> to vector<8x8xf32>
    %cst_102 = arith.constant dense<0.000000e+00> : vector<8x8xf32>
    %340 = tpu.matmul %338, %339, %cst_102 {dimension_numbers = #tpu.dot_dimension_numbers<[1], [1], [0], [0], [0, 0, 1, 0], [], []>} : vector<8x8xf32>, vector<8x8xf32>, vector<8x8xf32> -> vector<8x8xf32>
    %cst_103 = arith.constant dense<0xFF800000> : vector<8xf32>
    %341 = vector.multi_reduction <maximumf>, %340, %cst_103 [1] : vector<8x8xf32> to vector<8xf32>
    %342 = vector.shape_cast %341 : vector<8xf32> to vector<8x1xf32>
    %343 = vector.broadcast %342 : vector<8x1xf32> to vector<8x8xf32>
    %344 = arith.subf %340, %343 : vector<8x8xf32>
    %345 = math.exp %344 : vector<8x8xf32>
    %cst_104 = arith.constant dense<0.000000e+00> : vector<8xf32>
    %346 = vector.multi_reduction <add>, %345, %cst_104 [1] : vector<8x8xf32> to vector<8xf32>
    %347 = vector.shape_cast %346 : vector<8xf32> to vector<8x1xf32>
    %348 = tpu.reciprocal %347 {approx = true} : vector<8x1xf32> -> vector<8x1xf32>
    %349 = vector.broadcast %348 : vector<8x1xf32> to vector<8x8xf32>
    %350 = arith.mulf %345, %349 : vector<8x8xf32>
    %351 = vector.extract_strided_slice %337 {offsets = [0, 0], sizes = [8, 8], strides = [1, 1]} : vector<8x32xf32> to vector<8x8xf32>
    %cst_105 = arith.constant dense<0.000000e+00> : vector<8x8xf32>
    %352 = tpu.matmul %350, %351, %cst_105 {dimension_numbers = #tpu.dot_dimension_numbers<[1], [0], [0], [1], [0, 0, 1, 1], [], []>} : vector<8x8xf32>, vector<8x8xf32>, vector<8x8xf32> -> vector<8x8xf32>
    %353 = vector.extract_strided_slice %335 {offsets = [0, 8], sizes = [8, 8], strides = [1, 1]} : vector<8x32xf32> to vector<8x8xf32>
    %354 = vector.extract_strided_slice %336 {offsets = [0, 8], sizes = [8, 8], strides = [1, 1]} : vector<8x32xf32> to vector<8x8xf32>
    %cst_106 = arith.constant dense<0.000000e+00> : vector<8x8xf32>
    %355 = tpu.matmul %353, %354, %cst_106 {dimension_numbers = #tpu.dot_dimension_numbers<[1], [1], [0], [0], [0, 0, 1, 0], [], []>} : vector<8x8xf32>, vector<8x8xf32>, vector<8x8xf32> -> vector<8x8xf32>
    %cst_107 = arith.constant dense<0xFF800000> : vector<8xf32>
    %356 = vector.multi_reduction <maximumf>, %355, %cst_107 [1] : vector<8x8xf32> to vector<8xf32>
    %357 = vector.shape_cast %356 : vector<8xf32> to vector<8x1xf32>
    %358 = vector.broadcast %357 : vector<8x1xf32> to vector<8x8xf32>
    %359 = arith.subf %355, %358 : vector<8x8xf32>
    %360 = math.exp %359 : vector<8x8xf32>
    %cst_108 = arith.constant dense<0.000000e+00> : vector<8xf32>
    %361 = vector.multi_reduction <add>, %360, %cst_108 [1] : vector<8x8xf32> to vector<8xf32>
    %362 = vector.shape_cast %361 : vector<8xf32> to vector<8x1xf32>
    %363 = tpu.reciprocal %362 {approx = true} : vector<8x1xf32> -> vector<8x1xf32>
    %364 = vector.broadcast %363 : vector<8x1xf32> to vector<8x8xf32>
    %365 = arith.mulf %360, %364 : vector<8x8xf32>
    %366 = vector.extract_strided_slice %337 {offsets = [0, 8], sizes = [8, 8], strides = [1, 1]} : vector<8x32xf32> to vector<8x8xf32>
    %cst_109 = arith.constant dense<0.000000e+00> : vector<8x8xf32>
    %367 = tpu.matmul %365, %366, %cst_109 {dimension_numbers = #tpu.dot_dimension_numbers<[1], [0], [0], [1], [0, 0, 1, 1], [], []>} : vector<8x8xf32>, vector<8x8xf32>, vector<8x8xf32> -> vector<8x8xf32>
    %368 = vector.extract_strided_slice %335 {offsets = [0, 16], sizes = [8, 8], strides = [1, 1]} : vector<8x32xf32> to vector<8x8xf32>
    %369 = vector.extract_strided_slice %336 {offsets = [0, 16], sizes = [8, 8], strides = [1, 1]} : vector<8x32xf32> to vector<8x8xf32>
    %cst_110 = arith.constant dense<0.000000e+00> : vector<8x8xf32>
    %370 = tpu.matmul %368, %369, %cst_110 {dimension_numbers = #tpu.dot_dimension_numbers<[1], [1], [0], [0], [0, 0, 1, 0], [], []>} : vector<8x8xf32>, vector<8x8xf32>, vector<8x8xf32> -> vector<8x8xf32>
    %cst_111 = arith.constant dense<0xFF800000> : vector<8xf32>
    %371 = vector.multi_reduction <maximumf>, %370, %cst_111 [1] : vector<8x8xf32> to vector<8xf32>
    %372 = vector.shape_cast %371 : vector<8xf32> to vector<8x1xf32>
    %373 = vector.broadcast %372 : vector<8x1xf32> to vector<8x8xf32>
    %374 = arith.subf %370, %373 : vector<8x8xf32>
    %375 = math.exp %374 : vector<8x8xf32>
    %cst_112 = arith.constant dense<0.000000e+00> : vector<8xf32>
    %376 = vector.multi_reduction <add>, %375, %cst_112 [1] : vector<8x8xf32> to vector<8xf32>
    %377 = vector.shape_cast %376 : vector<8xf32> to vector<8x1xf32>
    %378 = tpu.reciprocal %377 {approx = true} : vector<8x1xf32> -> vector<8x1xf32>
    %379 = vector.broadcast %378 : vector<8x1xf32> to vector<8x8xf32>
    %380 = arith.mulf %375, %379 : vector<8x8xf32>
    %381 = vector.extract_strided_slice %337 {offsets = [0, 16], sizes = [8, 8], strides = [1, 1]} : vector<8x32xf32> to vector<8x8xf32>
    %cst_113 = arith.constant dense<0.000000e+00> : vector<8x8xf32>
    %382 = tpu.matmul %380, %381, %cst_113 {dimension_numbers = #tpu.dot_dimension_numbers<[1], [0], [0], [1], [0, 0, 1, 1], [], []>} : vector<8x8xf32>, vector<8x8xf32>, vector<8x8xf32> -> vector<8x8xf32>
    %383 = vector.extract_strided_slice %335 {offsets = [0, 24], sizes = [8, 8], strides = [1, 1]} : vector<8x32xf32> to vector<8x8xf32>
    %384 = vector.extract_strided_slice %336 {offsets = [0, 24], sizes = [8, 8], strides = [1, 1]} : vector<8x32xf32> to vector<8x8xf32>
    %cst_114 = arith.constant dense<0.000000e+00> : vector<8x8xf32>
    %385 = tpu.matmul %383, %384, %cst_114 {dimension_numbers = #tpu.dot_dimension_numbers<[1], [1], [0], [0], [0, 0, 1, 0], [], []>} : vector<8x8xf32>, vector<8x8xf32>, vector<8x8xf32> -> vector<8x8xf32>
    %cst_115 = arith.constant dense<0xFF800000> : vector<8xf32>
    %386 = vector.multi_reduction <maximumf>, %385, %cst_115 [1] : vector<8x8xf32> to vector<8xf32>
    %387 = vector.shape_cast %386 : vector<8xf32> to vector<8x1xf32>
    %388 = vector.broadcast %387 : vector<8x1xf32> to vector<8x8xf32>
    %389 = arith.subf %385, %388 : vector<8x8xf32>
    %390 = math.exp %389 : vector<8x8xf32>
    %cst_116 = arith.constant dense<0.000000e+00> : vector<8xf32>
    %391 = vector.multi_reduction <add>, %390, %cst_116 [1] : vector<8x8xf32> to vector<8xf32>
    %392 = vector.shape_cast %391 : vector<8xf32> to vector<8x1xf32>
    %393 = tpu.reciprocal %392 {approx = true} : vector<8x1xf32> -> vector<8x1xf32>
    %394 = vector.broadcast %393 : vector<8x1xf32> to vector<8x8xf32>
    %395 = arith.mulf %390, %394 : vector<8x8xf32>
    %396 = vector.extract_strided_slice %337 {offsets = [0, 24], sizes = [8, 8], strides = [1, 1]} : vector<8x32xf32> to vector<8x8xf32>
    %cst_117 = arith.constant dense<0.000000e+00> : vector<8x8xf32>
    %397 = tpu.matmul %395, %396, %cst_117 {dimension_numbers = #tpu.dot_dimension_numbers<[1], [0], [0], [1], [0, 0, 1, 1], [], []>} : vector<8x8xf32>, vector<8x8xf32>, vector<8x8xf32> -> vector<8x8xf32>
    %398 = tpu.concatenate %352, %367, %382, %397 in 1 : vector<8x8xf32>, vector<8x8xf32>, vector<8x8xf32>, vector<8x8xf32> -> vector<8x32xf32>
    %399 = tpu.concatenate %334, %398 in 0 : vector<8x32xf32>, vector<8x32xf32> -> vector<16x32xf32>
    %400 = vector.extract_strided_slice %258 {offsets = [0, 96], sizes = [32, 32], strides = [1, 1]} : vector<32x128xf32> to vector<32x32xf32>
    %cst_118 = arith.constant dense<0.000000e+00> : vector<16x32xf32>
    %401 = tpu.matmul %399, %400, %cst_118 {dimension_numbers = #tpu.dot_dimension_numbers<[1], [0], [0], [1], [0, 0, 1, 1], [], []>} : vector<16x32xf32>, vector<32x32xf32>, vector<16x32xf32> -> vector<16x32xf32>
    %402 = vector.extract_strided_slice %260 {offsets = [0, 96], sizes = [1, 32], strides = [1, 1]} : vector<1x128xf32> to vector<1x32xf32>
    %403 = vector.broadcast %402 : vector<1x32xf32> to vector<16x32xf32>
    %404 = arith.addf %401, %403 : vector<16x32xf32>
    %405 = arith.addf %256, %404 : vector<16x32xf32>
    %406 = vector.extract_strided_slice %6 {offsets = [2, 0], sizes = [1, 32], strides = [1, 1]} : vector<5x32xf32> to vector<1x32xf32>
    %407 = vector.extract_strided_slice %7 {offsets = [2, 0], sizes = [1, 32], strides = [1, 1]} : vector<5x32xf32> to vector<1x32xf32>
    %cst_119 = arith.constant dense<0.000000e+00> : vector<16xf32>
    %408 = vector.multi_reduction <add>, %405, %cst_119 [1] : vector<16x32xf32> to vector<16xf32>
    %409 = vector.shape_cast %408 : vector<16xf32> to vector<16x1xf32>
    %cst_120 = arith.constant 3.200000e+01 : f32
    %410 = vector.broadcast %cst_120 : f32 to vector<16x1xf32>
    %411 = arith.divf %409, %410 : vector<16x1xf32>
    %412 = vector.broadcast %411 : vector<16x1xf32> to vector<16x32xf32>
    %413 = arith.subf %405, %412 : vector<16x32xf32>
    %414 = arith.mulf %413, %413 : vector<16x32xf32>
    %cst_121 = arith.constant dense<0.000000e+00> : vector<16xf32>
    %415 = vector.multi_reduction <add>, %414, %cst_121 [1] : vector<16x32xf32> to vector<16xf32>
    %416 = vector.shape_cast %415 : vector<16xf32> to vector<16x1xf32>
    %cst_122 = arith.constant 3.200000e+01 : f32
    %417 = vector.broadcast %cst_122 : f32 to vector<16x1xf32>
    %418 = arith.divf %416, %417 : vector<16x1xf32>
    %419 = vector.broadcast %411 : vector<16x1xf32> to vector<16x32xf32>
    %420 = arith.subf %405, %419 : vector<16x32xf32>
    %cst_123 = arith.constant 9.99999974E-6 : f32
    %421 = vector.broadcast %cst_123 : f32 to vector<16x1xf32>
    %422 = arith.addf %418, %421 : vector<16x1xf32>
    %423 = math.rsqrt %422 : vector<16x1xf32>
    %424 = vector.broadcast %423 : vector<16x1xf32> to vector<16x32xf32>
    %425 = arith.mulf %420, %424 : vector<16x32xf32>
    %426 = vector.broadcast %406 : vector<1x32xf32> to vector<16x32xf32>
    %427 = arith.mulf %425, %426 : vector<16x32xf32>
    %428 = vector.broadcast %407 : vector<1x32xf32> to vector<16x32xf32>
    %429 = arith.addf %427, %428 : vector<16x32xf32>
    %430 = vector.extract_strided_slice %8 {offsets = [1, 0, 0], sizes = [1, 32, 64], strides = [1, 1, 1]} : vector<2x32x64xf32> to vector<1x32x64xf32>
    %431 = vector.shape_cast %430 : vector<1x32x64xf32> to vector<32x64xf32>
    %cst_124 = arith.constant dense<0.000000e+00> : vector<16x64xf32>
    %432 = tpu.matmul %429, %431, %cst_124 {dimension_numbers = #tpu.dot_dimension_numbers<[1], [0], [0], [1], [0, 0, 1, 1], [], []>} : vector<16x32xf32>, vector<32x64xf32>, vector<16x64xf32> -> vector<16x64xf32>
    %433 = vector.extract_strided_slice %9 {offsets = [1, 0, 0], sizes = [1, 1, 64], strides = [1, 1, 1]} : vector<2x1x64xf32> to vector<1x1x64xf32>
    %434 = vector.shape_cast %433 : vector<1x1x64xf32> to vector<1x64xf32>
    %435 = vector.broadcast %434 : vector<1x64xf32> to vector<16x64xf32>
    %436 = arith.addf %432, %435 : vector<16x64xf32>
    %cst_125 = arith.constant 0.000000e+00 : f32
    %437 = vector.broadcast %cst_125 : f32 to vector<16x64xf32>
    %438 = arith.maximumf %436, %437 : vector<16x64xf32>
    %439 = vector.extract_strided_slice %10 {offsets = [1, 0, 0], sizes = [1, 64, 32], strides = [1, 1, 1]} : vector<2x64x32xf32> to vector<1x64x32xf32>
    %440 = vector.shape_cast %439 : vector<1x64x32xf32> to vector<64x32xf32>
    %cst_126 = arith.constant dense<0.000000e+00> : vector<16x32xf32>
    %441 = tpu.matmul %438, %440, %cst_126 {dimension_numbers = #tpu.dot_dimension_numbers<[1], [0], [0], [1], [0, 0, 1, 1], [], []>} : vector<16x64xf32>, vector<64x32xf32>, vector<16x32xf32> -> vector<16x32xf32>
    %442 = vector.extract_strided_slice %11 {offsets = [1, 0, 0], sizes = [1, 1, 32], strides = [1, 1, 1]} : vector<2x1x32xf32> to vector<1x1x32xf32>
    %443 = vector.shape_cast %442 : vector<1x1x32xf32> to vector<1x32xf32>
    %444 = vector.broadcast %443 : vector<1x32xf32> to vector<16x32xf32>
    %445 = arith.addf %441, %444 : vector<16x32xf32>
    %446 = arith.addf %429, %445 : vector<16x32xf32>
    %447 = vector.extract_strided_slice %6 {offsets = [3, 0], sizes = [1, 32], strides = [1, 1]} : vector<5x32xf32> to vector<1x32xf32>
    %448 = vector.extract_strided_slice %7 {offsets = [3, 0], sizes = [1, 32], strides = [1, 1]} : vector<5x32xf32> to vector<1x32xf32>
    %cst_127 = arith.constant dense<0.000000e+00> : vector<16xf32>
    %449 = vector.multi_reduction <add>, %446, %cst_127 [1] : vector<16x32xf32> to vector<16xf32>
    %450 = vector.shape_cast %449 : vector<16xf32> to vector<16x1xf32>
    %cst_128 = arith.constant 3.200000e+01 : f32
    %451 = vector.broadcast %cst_128 : f32 to vector<16x1xf32>
    %452 = arith.divf %450, %451 : vector<16x1xf32>
    %453 = vector.broadcast %452 : vector<16x1xf32> to vector<16x32xf32>
    %454 = arith.subf %446, %453 : vector<16x32xf32>
    %455 = arith.mulf %454, %454 : vector<16x32xf32>
    %cst_129 = arith.constant dense<0.000000e+00> : vector<16xf32>
    %456 = vector.multi_reduction <add>, %455, %cst_129 [1] : vector<16x32xf32> to vector<16xf32>
    %457 = vector.shape_cast %456 : vector<16xf32> to vector<16x1xf32>
    %cst_130 = arith.constant 3.200000e+01 : f32
    %458 = vector.broadcast %cst_130 : f32 to vector<16x1xf32>
    %459 = arith.divf %457, %458 : vector<16x1xf32>
    %460 = vector.broadcast %452 : vector<16x1xf32> to vector<16x32xf32>
    %461 = arith.subf %446, %460 : vector<16x32xf32>
    %cst_131 = arith.constant 9.99999974E-6 : f32
    %462 = vector.broadcast %cst_131 : f32 to vector<16x1xf32>
    %463 = arith.addf %459, %462 : vector<16x1xf32>
    %464 = math.rsqrt %463 : vector<16x1xf32>
    %465 = vector.broadcast %464 : vector<16x1xf32> to vector<16x32xf32>
    %466 = arith.mulf %461, %465 : vector<16x32xf32>
    %467 = vector.broadcast %447 : vector<1x32xf32> to vector<16x32xf32>
    %468 = arith.mulf %466, %467 : vector<16x32xf32>
    %469 = vector.broadcast %448 : vector<1x32xf32> to vector<16x32xf32>
    %470 = arith.addf %468, %469 : vector<16x32xf32>
    %471 = vector.extract_strided_slice %6 {offsets = [4, 0], sizes = [1, 32], strides = [1, 1]} : vector<5x32xf32> to vector<1x32xf32>
    %472 = vector.extract_strided_slice %7 {offsets = [4, 0], sizes = [1, 32], strides = [1, 1]} : vector<5x32xf32> to vector<1x32xf32>
    %cst_132 = arith.constant dense<0.000000e+00> : vector<16xf32>
    %473 = vector.multi_reduction <add>, %470, %cst_132 [1] : vector<16x32xf32> to vector<16xf32>
    %474 = vector.shape_cast %473 : vector<16xf32> to vector<16x1xf32>
    %cst_133 = arith.constant 3.200000e+01 : f32
    %475 = vector.broadcast %cst_133 : f32 to vector<16x1xf32>
    %476 = arith.divf %474, %475 : vector<16x1xf32>
    %477 = vector.broadcast %476 : vector<16x1xf32> to vector<16x32xf32>
    %478 = arith.subf %470, %477 : vector<16x32xf32>
    %479 = arith.mulf %478, %478 : vector<16x32xf32>
    %cst_134 = arith.constant dense<0.000000e+00> : vector<16xf32>
    %480 = vector.multi_reduction <add>, %479, %cst_134 [1] : vector<16x32xf32> to vector<16xf32>
    %481 = vector.shape_cast %480 : vector<16xf32> to vector<16x1xf32>
    %cst_135 = arith.constant 3.200000e+01 : f32
    %482 = vector.broadcast %cst_135 : f32 to vector<16x1xf32>
    %483 = arith.divf %481, %482 : vector<16x1xf32>
    %484 = vector.broadcast %476 : vector<16x1xf32> to vector<16x32xf32>
    %485 = arith.subf %470, %484 : vector<16x32xf32>
    %cst_136 = arith.constant 9.99999974E-6 : f32
    %486 = vector.broadcast %cst_136 : f32 to vector<16x1xf32>
    %487 = arith.addf %483, %486 : vector<16x1xf32>
    %488 = math.rsqrt %487 : vector<16x1xf32>
    %489 = vector.broadcast %488 : vector<16x1xf32> to vector<16x32xf32>
    %490 = arith.mulf %485, %489 : vector<16x32xf32>
    %491 = vector.broadcast %471 : vector<1x32xf32> to vector<16x32xf32>
    %492 = arith.mulf %490, %491 : vector<16x32xf32>
    %493 = vector.broadcast %472 : vector<1x32xf32> to vector<16x32xf32>
    %494 = arith.addf %492, %493 : vector<16x32xf32>
    %cst_137 = arith.constant 1.000000e-10 : f32
    %495 = vector.broadcast %cst_137 : f32 to vector<16x1xf32>
    %496 = arith.addf %19, %495 : vector<16x1xf32>
    %cst_138 = arith.constant 1.000000e+00 : f32
    %497 = vector.broadcast %cst_138 : f32 to vector<16x1xf32>
    %498 = arith.divf %497, %496 : vector<16x1xf32>
    %499 = vector.extract_strided_slice %494 {offsets = [0, 16], sizes = [16, 16], strides = [1, 1]} : vector<16x32xf32> to vector<16x16xf32>
    %500 = vector.broadcast %20 : vector<16x1xf32> to vector<16x16xf32>
    %501 = arith.subf %499, %500 : vector<16x16xf32>
    %502 = vector.broadcast %498 : vector<16x1xf32> to vector<16x16xf32>
    %503 = arith.mulf %501, %502 : vector<16x16xf32>
    %504 = vector.broadcast %34 : vector<16x1xf32> to vector<16x16xf32>
    %505 = arith.mulf %503, %504 : vector<16x16xf32>
    %506 = vector.broadcast %24 : vector<16x1xf32> to vector<16x16xf32>
    %507 = arith.addf %505, %506 : vector<16x16xf32>
    %508 = vector.extract_strided_slice %507 {offsets = [0, 0], sizes = [8, 16], strides = [1, 1]} : vector<16x16xf32> to vector<8x16xf32>
    %509 = tpu.transpose %508, [1, 0] : vector<8x16xf32> -> vector<16x8xf32>
    %510 = vector.extract_strided_slice %507 {offsets = [8, 0], sizes = [8, 16], strides = [1, 1]} : vector<16x16xf32> to vector<8x16xf32>
    %511 = tpu.transpose %510, [1, 0] : vector<8x16xf32> -> vector<16x8xf32>
    %c0_139 = arith.constant 0 : index
    %c0_140 = arith.constant 0 : index
    %c0_141 = arith.constant 0 : index
    %512 = vector.load %arg11[%c0_139, %c0_140, %c0_141] : memref<2x16x8xf32, #tpu.memory_space<vmem>>, vector<1x16x8xf32>
    %513 = vector.shape_cast %512 : vector<1x16x8xf32> to vector<16x8xf32>
    %514 = vector.shape_cast %509 : vector<16x8xf32> to vector<1x16x8xf32>
    tpu.vector_store %arg11[%c0_139, %c0_140, %c0_141], %514 {strides = array<i32>} : memref<2x16x8xf32, #tpu.memory_space<vmem>>, vector<1x16x8xf32>,
    %c1_142 = arith.constant 1 : index
    %c0_143 = arith.constant 0 : index
    %c0_144 = arith.constant 0 : index
    %515 = vector.load %arg11[%c1_142, %c0_143, %c0_144] : memref<2x16x8xf32, #tpu.memory_space<vmem>>, vector<1x16x8xf32>
    %516 = vector.shape_cast %515 : vector<1x16x8xf32> to vector<16x8xf32>
    %517 = vector.shape_cast %511 : vector<16x8xf32> to vector<1x16x8xf32>
    tpu.vector_store %arg11[%c1_142, %c0_143, %c0_144], %517 {strides = array<i32>} : memref<2x16x8xf32, #tpu.memory_space<vmem>>, vector<1x16x8xf32>,
    return
  }
  func.func @transform_0(%arg0: i32) -> (i32, i32, i32) {
    %c0_i32 = arith.constant 0 : i32
    %c0_i32_0 = arith.constant 0 : i32
    %c0_i32_1 = arith.constant 0 : i32
    return %arg0, %c0_i32, %c0_i32_0 : i32, i32, i32
  }
  func.func @transform_1(%arg0: i32) -> (i32, i32, i32) {
    %c0_i32 = arith.constant 0 : i32
    %c0_i32_0 = arith.constant 0 : i32
    %c0_i32_1 = arith.constant 0 : i32
    %c0_i32_2 = arith.constant 0 : i32
    return %c0_i32, %c0_i32_0, %c0_i32_1 : i32, i32, i32
  }
  func.func @transform_2(%arg0: i32) -> (i32, i32, i32) {
    %c0_i32 = arith.constant 0 : i32
    %c0_i32_0 = arith.constant 0 : i32
    %c0_i32_1 = arith.constant 0 : i32
    %c0_i32_2 = arith.constant 0 : i32
    return %c0_i32, %c0_i32_0, %c0_i32_1 : i32, i32, i32
  }
  func.func @transform_3(%arg0: i32) -> (i32, i32, i32) {
    %c0_i32 = arith.constant 0 : i32
    %c0_i32_0 = arith.constant 0 : i32
    %c0_i32_1 = arith.constant 0 : i32
    %c0_i32_2 = arith.constant 0 : i32
    return %c0_i32, %c0_i32_0, %c0_i32_1 : i32, i32, i32
  }
  func.func @transform_4(%arg0: i32) -> (i32, i32) {
    %c0_i32 = arith.constant 0 : i32
    %c0_i32_0 = arith.constant 0 : i32
    %c0_i32_1 = arith.constant 0 : i32
    return %c0_i32, %c0_i32_0 : i32, i32
  }
  func.func @transform_5(%arg0: i32) -> (i32, i32) {
    %c0_i32 = arith.constant 0 : i32
    %c0_i32_0 = arith.constant 0 : i32
    %c0_i32_1 = arith.constant 0 : i32
    return %c0_i32, %c0_i32_0 : i32, i32
  }
  func.func @transform_6(%arg0: i32) -> (i32, i32, i32) {
    %c0_i32 = arith.constant 0 : i32
    %c0_i32_0 = arith.constant 0 : i32
    %c0_i32_1 = arith.constant 0 : i32
    %c0_i32_2 = arith.constant 0 : i32
    return %c0_i32, %c0_i32_0, %c0_i32_1 : i32, i32, i32
  }
  func.func @transform_7(%arg0: i32) -> (i32, i32, i32) {
    %c0_i32 = arith.constant 0 : i32
    %c0_i32_0 = arith.constant 0 : i32
    %c0_i32_1 = arith.constant 0 : i32
    %c0_i32_2 = arith.constant 0 : i32
    return %c0_i32, %c0_i32_0, %c0_i32_1 : i32, i32, i32
  }
  func.func @transform_8(%arg0: i32) -> (i32, i32, i32) {
    %c0_i32 = arith.constant 0 : i32
    %c0_i32_0 = arith.constant 0 : i32
    %c0_i32_1 = arith.constant 0 : i32
    %c0_i32_2 = arith.constant 0 : i32
    return %c0_i32, %c0_i32_0, %c0_i32_1 : i32, i32, i32
  }
  func.func @transform_9(%arg0: i32) -> (i32, i32, i32) {
    %c0_i32 = arith.constant 0 : i32
    %c0_i32_0 = arith.constant 0 : i32
    %c0_i32_1 = arith.constant 0 : i32
    %c0_i32_2 = arith.constant 0 : i32
    return %c0_i32, %c0_i32_0, %c0_i32_1 : i32, i32, i32
  }
  func.func @transform_10(%arg0: i32) -> (i32, i32, i32) {
    %c0_i32 = arith.constant 0 : i32
    %c0_i32_0 = arith.constant 0 : i32
    %c0_i32_1 = arith.constant 0 : i32
    return %arg0, %c0_i32, %c0_i32_0 : i32, i32, i32
  }
}

</mosaic_0001>

<bundles_post_ra>
// kernel: tpu_custom_call.1
= control target key start
LH: loop header
LB: loop body
LE: loop exit
PB: predicated region body
PF: predicated region fallthrough
CT: control target
= control target key end

     0   :  { %vm151_vm0 = vcmask 261120   ;;  %v4614_v12 = vmov 0   ;;  %v4615_v58 = vmov 0.0   ;;  %vm4616_vm5 = vmmov 0   ;;  %s4617_s22 = smov 96   ;;  %s4618_s23 = smov 120   ;;  %s5347_s0 = inlined_call_operand.vmem [shape: f32[2,32,8], index: 0, kind: input, shape index: {}]   ;;  %s5348_s1 = inlined_call_operand.vmem [shape: f32[2,8,1], index: 1, kind: input, shape index: {}]   ;;  %s5349_s2 = inlined_call_operand.vmem [shape: f32[2,32,128], index: 2, kind: input, shape index: {}]   ;;  %s5350_s3 = inlined_call_operand.vmem [shape: f32[2,1,128], index: 3, kind: input, shape index: {}]   ;;  %s5351_s6 = inlined_call_operand.vmem [shape: f32[2,32,64], index: 6, kind: input, shape index: {}]   ;;  %s5352_s8 = inlined_call_operand.vmem [shape: f32[2,64,32], index: 8, kind: input, shape index: {}]   ;;  %s5353_s4 = inlined_call_operand.vmem [shape: f32[5,32], index: 4, kind: input, shape index: {}]   ;;  %s5354_s5 = inlined_call_operand.vmem [shape: f32[5,32], index: 5, kind: input, shape index: {}]   ;;  %s5355_s7 = inlined_call_operand.vmem [shape: f32[2,1,64], index: 7, kind: input, shape index: {}]   ;;  %s5356_s9 = inlined_call_operand.vmem [shape: f32[2,1,32], index: 9, kind: input, shape index: {}]   ;;  %s5357_s10 = inlined_call_operand.vmem [shape: f32[2,16,8], index: 10, kind: output, shape index: {}]  }
   0x1   :  { %v3937_v0 = vld [vmem:[%s5347_s0 + $0x20] sm:$0xff]  ;;  %v3938_v2 = vld [vmem:[%s5347_s0 + $0x28] sm:$0xff]  ;;  %v3939_v4 = vld [vmem:[%s5347_s0 + $0x30] sm:$0xff]  ;;  %4154 = vmatprep.subr.mxu0 %v4615_v58  ;;  %4156 = vmatprep.mubr.msk.f32.mxu0 %vm4616_vm5, %v4615_v58  ;;  %s4619_s24 = smov 88   ;;  %s4620_s25 = smov 112   ;;  %vm299_vm6 = vcmask 64512  }
   0x2   :  { %v78_v1 = vld [vmem:[%s5347_s0] sm:$0xff]  ;;  %119 = vxpose.xlu1.b32.start [1/4] (short) (narrow) %v3937_v0, 8  ;;  %v79_v3 = vld [vmem:[%s5347_s0 + $0x8] sm:$0xff]  ;;  %v80_v5 = vld [vmem:[%s5347_s0 + $0x10] sm:$0xff]  ;;  %s4621_s26 = smov 80   ;;  %s4622_s27 = smov 104  }
   0x3   :  { %82 = vxpose.xlu0.b32.start [1/4] (short) (narrow) %v78_v1, 8  ;;  %v3940_v6 = vld [vmem:[%s5347_s0 + $0x38] sm:$0xff]  ;;  %v35_v13 = vld [vmem:[%s5348_s1] sm:$0xff]  ;;  %v3936_v24 = vld [vmem:[%s5348_s1 + $0x8] sm:$0xff]  ;;  %s4623_s28 = smov 72   ;;  %s4624_s29 = smov 56  }
   0x4   :  { %v81_v7 = vld [vmem:[%s5347_s0 + $0x18] sm:$0xff]  ;;  %v4730_v25 = vld [vmem:[%s5349_s2] sm:$0xff]  ;;  %v4735_v26 = vld [vmem:[%s5349_s2 + $0x8] sm:$0xff]  ;;  %s4625_s30 = smov 48   ;;  %s4626_s0 = smov 64   ;;  %vm970_vm7 = vcmask 130048  }
   0x5   :  { %v4397_v27 = vpack.c.bf16 %v4735_v26, %v4730_v25  ;;  %v4742_v28 = vld [vmem:[%s5349_s2 + $0x10] sm:$0xff]  ;;  %v4747_v29 = vld [vmem:[%s5349_s2 + $0x18] sm:$0xff]  ;;  %v4497_v31 = vpack.i.bf16 %v4735_v26, %v4730_v25  ;;  %v4780_v59 = vld [vmem:[%s5350_s3] ss:$0 sm:$0xff]  ;;  %s4627_s11 = smov 40   ;;  %s5364_s12 = smov 32  }
   0x6   :  { %120 = vxpose.xlu1.b32.cont [2/4] (short) (narrow) %v3938_v2, 8  ;;  %v4401_v30 = vpack.c.bf16 %v4747_v29, %v4742_v28  ;;  %s5362_s13 = smov 8   ;;  %s5360_s14 = smov 16   ;;  %vm972_vm8 = vcmask 195584   ;;  %vm1884_vm9 = vcmask 523264  }
   0x7   :  { %83 = vxpose.xlu0.b32.cont [2/4] (short) (narrow) %v79_v3, 8  ;;  %4398 = vmatprep.subr.bf16.mxu1 %v4397_v27  ;;  %s5358_s15 = smov 24  }
   0x8   :  { %4400 = vmatpush3.bf16.msra.mxu1 %v4397_v27 }
   0x9   :  { %4402 = vmatprep.subr.bf16.mxu1 %v4401_v30 }
   0xa   :  { %121 = vxpose.xlu1.b32.cont [3/4] (short) (narrow) %v3939_v4, 8 }
   0xb   :  { %84 = vxpose.xlu0.b32.cont [3/4] (short) (narrow) %v80_v5, 8 }
   0xc   :  { %4404 = vmatpush3.bf16.msra.mxu1 %v4401_v30 }
   0xd   :  { %4144 = vmatprep.subr.mxu1 %v4615_v58 }
   0xe   :  { %122 = vxpose.xlu1.b32.end [4/4] (short) (narrow) %v3940_v6, 8 }
   0xf   :  { %85 = vxpose.xlu0.b32.end [4/4] (short) (narrow) %v81_v7, 8 }
  0x2c   :  { %4496 = vset.pattern.permute.xlu1 %v4614_v12 }
  0x38   :  { %4495 = vset.pattern.permute.xlu0 %v4614_v12 }
  0x82   :  { %v135_v8 = vpop.trf.xlu1 }
  0x83   :  { %v98_v9 = vpop.trf.xlu0  ;;  %v155_v10 = vsel %vm151_vm0, %v135_v8, 0.0 }
  0x84   :  { %v152_v11 = vsel %vm151_vm0, %v98_v9, 0.0  ;;  %156 = vadd.xlane.f32.xlu1 %v155_v10 }
  0x85   :  { %153 = vadd.xlane.f32.xlu0 %v152_v11 }
  0x9b   :  { %195 = vperm.xlu0 %4495, %v35_v13  }
 0x111   :  { %v157_v14 = vpop.xlane.xlu1 %156 }
 0x112   :  { %v154_v15 = vpop.xlane.xlu0 %153  ;;  %v4716_v16 = vmul.f32 0.03125, %v157_v14 }
 0x113   :  { %v4718_v17 = vmul.f32 0.03125, %v154_v15 }
 0x114   :  { %v162_v18 = vsub.f32 %v135_v8, %v4716_v16 }
 0x115   :  { %v161_v19 = vsub.f32 %v98_v9, %v4718_v17 }
 0x116   :  { %v164_v22 = vmul.f32 %v162_v18, %v162_v18 }
 0x117   :  { %v163_v20 = vmul.f32 %v161_v19, %v161_v19 }
 0x118   :  { %v168_v23 = vsel %vm151_vm0, %v164_v22, 0.0 }
 0x119   :  { %v165_v21 = vsel %vm151_vm0, %v163_v20, 0.0 }
 0x11a   :  { %166 = vadd.xlane.f32.xlu1 %v165_v21  ;;  %v196_v49 = vpop.permute.xlu0 %195 }
 0x11e   :  { %169 = vadd.xlane.f32.xlu1 %v168_v23 }
 0x12f   :  { %202 = vperm.xlu1 %4496, %v3936_v24  }
 0x1a7   :  { %v167_v32 = vpop.xlane.xlu1 %166 }
 0x1a8   :  { %v171_v33 = vmul.f32 0.03125, %v167_v32 }
 0x1aa   :  { %v173_v34 = vadd.f32 1e-05, %v171_v33 }
 0x1ab   :  { %v170_v35 = vpop.xlane.xlu1 %169 }
 0x1ac   :  { %4517 = vrsqrt.f32 %v173_v34  ;;  %v172_v36 = vmul.f32 0.03125, %v170_v35  ;;  %vm177_vm1 = vcmp.eq.f32.partialorder %v173_v34, inf  ;;  %v180_v40 = vand.u32 2147483648, %v173_v34 }
 0x1ad   :  { %vm179_vm2 = vcmp.eq.f32.partialorder %v173_v34, 0.0 }
 0x1ae   :  { %v174_v37 = vadd.f32 1e-05, %v172_v36 }
 0x1af   :  { %v4759_v51 = vpop.permute.xlu1 %202 }
 0x1b0   :  { %4519 = vrsqrt.f32 %v174_v37  ;;  %vm184_vm3 = vcmp.eq.f32.partialorder %v174_v37, inf  ;;  %v187_v45 = vand.u32 2147483648, %v174_v37  ;;  %vm186_vm4 = vcmp.eq.f32.partialorder %v174_v37, 0.0 }
 0x1b6   :  { %v4518_v38 = vpop.eup %4517 }
 0x1b7   :  { %v176_v39 = vmul.f32 %v4518_v38, %v173_v34 }
 0x1b9   :  { %v178_v41 = vsel %vm177_vm1, %v173_v34, %v176_v39 }
 0x1ba   :  { %v4520_v42 = vpop.eup %4519  ;;  %v4753_v43 = vsel %vm179_vm2, %v180_v40, %v178_v41 }
 0x1bb   :  { %v183_v44 = vmul.f32 %v4520_v42, %v174_v37  ;;  %4521 = vrcp.f32 %v4753_v43 }
 0x1bd   :  { %v185_v46 = vsel %vm184_vm3, %v174_v37, %v183_v44 }
 0x1be   :  { %v4756_v47 = vsel %vm186_vm4, %v187_v45, %v185_v46 }
 0x1bf   :  { %4523 = vrcp.f32 %v4756_v47 }
 0x1c5   :  { %v4522_v48 = vpop.eup %4521 }
 0x1c6   :  { %v190_v50 = vmul.f32 %v4522_v48, %v161_v19 }
 0x1c8   :  { %v198_v52 = vmul.f32 %v196_v49, %v190_v50 }
 0x1c9   :  { %v4524_v53 = vpop.eup %4523 }
 0x1ca   :  { %v192_v54 = vmul.f32 %v4524_v53, %v162_v18  ;;  %v4762_v55 = vadd.f32 %v4759_v51, %v198_v52 }
 0x1cc   :  { %v199_v56 = vmul.f32 %v196_v49, %v192_v54  ;;  %4141 = vmatprep.mubr.msk.f32.mxu1 %vm151_vm0, %v4762_v55 }
 0x1ce   :  { %v4767_v57 = vadd.f32 %v4759_v51, %v199_v56 }
 0x1d0   :  { %4142 = vmatmul.mubr.msk.f32.vlgmr.msra.gmra.mrb[0].mxu1 %vm151_vm0, %v4767_v57 }
 0x1d1   :  { %4146 = vmatprep.mubr.msk.f32.mxu1 %vm4616_vm5, %v4615_v58 }
 0x2a3   :  { %v4143_v60 = vpop.f32.mrb[0].mxu1 }
 0x2a4   :  { %v4783_v61 = vadd.f32 %v4143_v60, %v4780_v59  ;;  %v285_v62 = vpop.f32.mrb[1].mxu1 }
 0x2a5   :  { %v4786_v63 = vadd.f32 %v4780_v59, %v285_v62 }
 0x2a6   :  { %975 = vrot.lane.b32.xlu0 %v4783_v61, %s4617_s22  ;;  %v295_v0 = vmul.f32 0.35355338, %v4783_v61 }
 0x2a7   :  { %297 = vrot.lane.b32.xlu1 %v4786_v63, %s4617_s22  ;;  %v294_v1 = vmul.f32 0.35355338, %v4786_v63 }
 0x2aa   :  { %1139 = vrot.lane.b32.xlu0 %v295_v0, %s4618_s23 }
 0x2ab   :  { %464 = vrot.lane.b32.xlu1 %v4786_v63, %s4619_s24 }
 0x2ae   :  { %1304 = vrot.lane.b32.xlu0 %v295_v0, %s4620_s25 }
 0x2af   :  { %629 = vrot.lane.b32.xlu1 %v4786_v63, %s4621_s26 }
 0x2b2   :  { %1469 = vrot.lane.b32.xlu0 %v295_v0, %s4622_s27 }
 0x2b3   :  { %794 = vrot.lane.b32.xlu1 %v4786_v63, %s4623_s28 }
 0x2b7   :  { %462 = vrot.lane.b32.xlu1 %v294_v1, %s4618_s23 }
 0x2bb   :  { %627 = vrot.lane.b32.xlu1 %v294_v1, %s4620_s25 }
 0x2bf   :  { %792 = vrot.lane.b32.xlu1 %v294_v1, %s4622_s27 }
 0x2c3   :  { %1141 = vrot.lane.b32.xlu1 %v4783_v61, %s4619_s24 }
 0x2c7   :  { %1306 = vrot.lane.b32.xlu1 %v4783_v61, %s4621_s26 }
 0x2cb   :  { %1471 = vrot.lane.b32.xlu1 %v4783_v61, %s4623_s28 }
 0x318   :  { %v976_v8 = vpop.permute.xlu0 %975 }
 0x319   :  { %v298_v2 = vpop.permute.xlu1 %297 }
 0x31a   :  { %4145 = vmatpush3.xpose.msk.msra.mxu1 %vm299_vm6, %v298_v2 }
 0x31b   :  { %4149 = vmatprep.subr.mxu1 %v4615_v58 }
 0x31c   :  { %v1140_v10 = vpop.permute.xlu0 %1139 }
 0x31d   :  { %v465_v3 = vpop.permute.xlu1 %464  ;;  %4147 = vmatmul.mubr.msk.f32.vlgmr.msra.gmra.mrb[2].mxu1 %vm299_vm6, %v294_v1 }
 0x31e   :  { %4155 = vmatpush3.xpose.msk.msra.mxu0 %vm299_vm6, %v465_v3  ;;  %4151 = vmatprep.mubr.msk.f32.mxu1 %vm4616_vm5, %v4615_v58 }
 0x31f   :  { %4164 = vmatprep.subr.mxu0 %v4615_v58 }
 0x320   :  { %v1305_v13 = vpop.permute.xlu0 %1304 }
 0x321   :  { %v630_v4 = vpop.permute.xlu1 %629 }
 0x324   :  { %v1470_v15 = vpop.permute.xlu0 %1469 }
 0x325   :  { %v795_v5 = vpop.permute.xlu1 %794 }
 0x329   :  { %v463_v6 = vpop.permute.xlu1 %462 }
 0x32a   :  { %4157 = vmatmul.mubr.msk.f32.vlgmr.msra.gmra.mrb[0].mxu0 %vm299_vm6, %v463_v6 }
 0x32b   :  { %4165 = vmatpush3.xpose.msk.msra.mxu0 %vm299_vm6, %v630_v4  ;;  %4166 = vmatprep.mubr.msk.f32.mxu0 %vm4616_vm5, %v4615_v58 }
 0x32c   :  { %4174 = vmatprep.subr.mxu0 %v4615_v58 }
 0x32d   :  { %v628_v7 = vpop.permute.xlu1 %627 }
 0x32e   :  { %4167 = vmatmul.mubr.msk.f32.vlgmr.msra.gmra.mrb[2].mxu0 %vm299_vm6, %v628_v7 }
 0x32f   :  { %4175 = vmatpush3.xpose.msk.msra.mxu0 %vm299_vm6, %v795_v5  ;;  %4176 = vmatprep.mubr.msk.f32.mxu0 %vm4616_vm5, %v4615_v58 }
 0x330   :  { %4184 = vmatprep.subr.mxu0 %v4615_v58 }
 0x331   :  { %v793_v9 = vpop.permute.xlu1 %792 }
 0x332   :  { %4177 = vmatmul.mubr.msk.f32.vlgmr.msra.gmra.mrb[4].mxu0 %vm299_vm6, %v793_v9 }
 0x333   :  { %4185 = vmatpush3.xpose.msk.msra.mxu0 %vm299_vm6, %v976_v8  ;;  %4186 = vmatprep.mubr.msk.f32.mxu0 %vm4616_vm5, %v4615_v58 }
 0x334   :  { %4194 = vmatprep.subr.mxu0 %v4615_v58 }
 0x335   :  { %v1142_v11 = vpop.permute.xlu1 %1141 }
 0x336   :  { %4187 = vmatmul.mubr.msk.f32.vlgmr.msra.gmra.mrb[6].mxu0 %vm299_vm6, %v295_v0 }
 0x337   :  { %4195 = vmatpush3.xpose.msk.msra.mxu0 %vm299_vm6, %v1142_v11  ;;  %4196 = vmatprep.mubr.msk.f32.mxu0 %vm4616_vm5, %v4615_v58 }
 0x338   :  { %4204 = vmatprep.subr.mxu0 %v4615_v58 }
 0x339   :  { %v1307_v12 = vpop.permute.xlu1 %1306 }
 0x33a   :  { %4197 = vmatmul.mubr.msk.f32.vlgmr.msra.gmra.mrb[8].mxu0 %vm299_vm6, %v1140_v10 }
 0x33b   :  { %4205 = vmatpush3.xpose.msk.msra.mxu0 %vm299_vm6, %v1307_v12  ;;  %4206 = vmatprep.mubr.msk.f32.mxu0 %vm4616_vm5, %v4615_v58 }
 0x33c   :  { %4214 = vmatprep.subr.mxu0 %v4615_v58 }
 0x33d   :  { %v1472_v14 = vpop.permute.xlu1 %1471 }
 0x33e   :  { %4207 = vmatmul.mubr.msk.f32.vlgmr.msra.gmra.mrb[10].mxu0 %vm299_vm6, %v1305_v13 }
 0x33f   :  { %4215 = vmatpush3.xpose.msk.msra.mxu0 %vm299_vm6, %v1472_v14  ;;  %4216 = vmatprep.mubr.msk.f32.mxu0 %vm4616_vm5, %v4615_v58 }
 0x342   :  { %4217 = vmatmul.mubr.msk.f32.vlgmr.msra.gmra.mrb[12].mxu0 %vm299_vm6, %v1470_v15 }
 0x3f0   :  { %v371_v18 = vpop.f32.mrb[2].mxu1 }
 0x3f1   :  { %v4148_v19 = vpop.f32.mrb[3].mxu1  ;;  %v375_v20 = vsel %vm299_vm6, %v371_v18, -inf }
 0x3f2   :  { %376 = vmax.xlane.f32.xlu1 %v375_v20 }
 0x3fd   :  { %v536_v21 = vpop.f32.mrb[0].mxu0 }
 0x3fe   :  { %v4158_v22 = vpop.f32.mrb[1].mxu0  ;;  %v540_v23 = vsel %vm299_vm6, %v536_v21, -inf }
 0x3ff   :  { %541 = vmax.xlane.f32.xlu0 %v540_v23 }
 0x401   :  { %v701_v24 = vpop.f32.mrb[2].mxu0 }
 0x402   :  { %v4168_v27 = vpop.f32.mrb[3].mxu0  ;;  %v705_v30 = vsel %vm299_vm6, %v701_v24, -inf }
 0x403   :  { %706 = vmax.xlane.f32.xlu0 %v705_v30 }
 0x405   :  { %v4852_v32 = vpop.f32.mrb[4].mxu0 }
 0x406   :  { %v4178_v33 = vpop.f32.mrb[5].mxu0  ;;  %v870_v34 = vsel %vm299_vm6, %v4852_v32, -inf }
 0x407   :  { %871 = vmax.xlane.f32.xlu0 %v870_v34 }
 0x409   :  { %v1048_v35 = vpop.f32.mrb[6].mxu0 }
 0x40a   :  { %v4188_v36 = vpop.f32.mrb[7].mxu0  ;;  %v1052_v37 = vsel %vm299_vm6, %v1048_v35, -inf }
 0x40b   :  { %1053 = vmax.xlane.f32.xlu1 %v1052_v37 }
 0x40d   :  { %v1213_v38 = vpop.f32.mrb[8].mxu0 }
 0x40e   :  { %v4198_v39 = vpop.f32.mrb[9].mxu0  ;;  %v1217_v40 = vsel %vm299_vm6, %v1213_v38, -inf }
 0x40f   :  { %1218 = vmax.xlane.f32.xlu0 %v1217_v40 }
 0x411   :  { %v1378_v41 = vpop.f32.mrb[10].mxu0 }
 0x412   :  { %v4208_v42 = vpop.f32.mrb[11].mxu0  ;;  %v1382_v44 = vsel %vm299_vm6, %v1378_v41, -inf }
 0x413   :  { %1383 = vmax.xlane.f32.xlu1 %v1382_v44 }
 0x415   :  { %v1543_v45 = vpop.f32.mrb[12].mxu0 }
 0x416   :  { %v4218_v46 = vpop.f32.mrb[13].mxu0  ;;  %v1547_v48 = vsel %vm299_vm6, %v1543_v45, -inf }
 0x417   :  { %1548 = vmax.xlane.f32.xlu0 %v1547_v48 }
 0x424   :  { %551 = vrot.lane.b32.xlu1 %v4786_v63, %s4624_s29 }
 0x428   :  { %716 = vrot.lane.b32.xlu1 %v4786_v63, %s4625_s30 }
 0x42d   :  { %386 = vrot.lane.b32.xlu0 %v4786_v63, %s4626_s0 }
 0x47f   :  { %v377_v49 = vpop.xlane.xlu1 %376 }
 0x480   :  { %v378_v50 = vsub.f32 %v371_v18, %v377_v49 }
 0x482   :  { %v379_v52 = vmul.f32 1.442695, %v378_v50 }
 0x484   :  { %4525 = vpow2.f32 %v379_v52 }
 0x48c   :  { %v542_v53 = vpop.xlane.xlu0 %541 }
 0x48d   :  { %v543_v54 = vsub.f32 %v536_v21, %v542_v53 }
 0x48e   :  { %v4866_v56 = vpop.eup %4525 }
 0x48f   :  { %v544_v60 = vmul.f32 1.442695, %v543_v54  ;;  %v381_v62 = vsel %vm299_vm6, %v4866_v56, 0.0 }
 0x490   :  { %382 = vadd.xlane.f32.xlu1 %v381_v62  ;;  %v707_v0 = vpop.xlane.xlu0 %706 }
 0x491   :  { %4527 = vpow2.f32 %v544_v60  ;;  %v708_v7 = vsub.f32 %v701_v24, %v707_v0 }
 0x493   :  { %v709_v9 = vmul.f32 1.442695, %v708_v7 }
 0x494   :  { %v872_v2 = vpop.xlane.xlu0 %871 }
 0x495   :  { %4529 = vpow2.f32 %v709_v9  ;;  %v873_v18 = vsub.f32 %v4852_v32, %v872_v2 }
 0x497   :  { %v874_v20 = vmul.f32 1.442695, %v873_v18 }
 0x498   :  { %v1054_v8 = vpop.xlane.xlu1 %1053 }
 0x499   :  { %v1055_v10 = vsub.f32 %v1048_v35, %v1054_v8 }
 0x49b   :  { %v4870_v1 = vpop.eup %4527  ;;  %v1056_v12 = vmul.f32 1.442695, %v1055_v10 }
 0x49c   :  { %v546_v3 = vsel %vm299_vm6, %v4870_v1, 0.0  ;;  %v1219_v4 = vpop.xlane.xlu0 %1218 }
 0x49d   :  { %547 = vadd.xlane.f32.xlu0 %v546_v3  ;;  %4531 = vpow2.f32 %v1056_v12  ;;  %v1220_v21 = vsub.f32 %v1213_v38, %v1219_v4 }
 0x49f   :  { %v4530_v22 = vpop.eup %4529  ;;  %v1221_v23 = vmul.f32 1.442695, %v1220_v21 }
 0x4a0   :  { %v1384_v11 = vpop.xlane.xlu1 %1383  ;;  %v711_v24 = vsel %vm299_vm6, %v4530_v22, 0.0 }
 0x4a1   :  { %1063 = vrot.lane.b32.xlu1 %v4783_v61, %s4626_s0  ;;  %v1385_v13 = vsub.f32 %v1378_v41, %v1384_v11 }
 0x4a3   :  { %v1386_v14 = vmul.f32 1.442695, %v1385_v13 }
 0x4a4   :  { %v1549_v5 = vpop.xlane.xlu0 %1548  ;;  %v552_v39 = vpop.permute.xlu1 %551 }
 0x4a5   :  { %v1550_v15 = vsub.f32 %v1543_v45, %v1549_v5  ;;  %4533 = vpow2.f32 %v1386_v14  ;;  %v4502_v14 = vpack.i.bf16 %v4747_v29, %v4742_v28 }
 0x4a7   :  { %v1551_v19 = vmul.f32 1.442695, %v1550_v15 }
 0x4a8   :  { %v387_v6 = vpop.permute.xlu0 %386  ;;  %v717_v40 = vpop.permute.xlu1 %716 }
 0x4a9   :  { %4150 = vmatpush3.msra.mxu1 %v387_v6  ;;  %4535 = vpow2.f32 %v1551_v19 }
 0x4aa   :  { %4159 = vmatprep.subr.mxu1 %v4615_v58  ;;  %4537 = vpow2.f32 %v874_v20 }
 0x4ab   :  { %4539 = vpow2.f32 %v1221_v23 }
 0x4b3   :  { %881 = vrot.lane.b32.xlu0 %v4786_v63, %s4627_s11  ;;  %v4881_v63 = vpop.eup %4531 }
 0x4b4   :  { %v1058_v27 = vsel %vm299_vm6, %v4881_v63, 0.0  ;;  %v4885_v30 = vpop.eup %4533 }
 0x4b5   :  { %v1388_v32 = vsel %vm299_vm6, %v4885_v30, 0.0  ;;  %v4889_v33 = vpop.eup %4535 }
 0x4b6   :  { %v4538_v34 = vpop.eup %4537  ;;  %v1553_v35 = vsel %vm299_vm6, %v4889_v33, 0.0 }
 0x4b7   :  { %v876_v36 = vsel %vm299_vm6, %v4538_v34, 0.0  ;;  %v4540_v37 = vpop.eup %4539 }
 0x4b8   :  { %v1223_v38 = vsel %vm299_vm6, %v4540_v37, 0.0 }
 0x4c5   :  { %712 = vadd.xlane.f32.xlu1 %v711_v24 }
 0x4c9   :  { %1059 = vadd.xlane.f32.xlu1 %v1058_v27 }
 0x4cd   :  { %1389 = vadd.xlane.f32.xlu1 %v1388_v32 }
 0x4d1   :  { %1554 = vadd.xlane.f32.xlu1 %v1553_v35 }
 0x4d2   :  { %877 = vadd.xlane.f32.xlu0 %v876_v36 }
 0x4d6   :  { %1224 = vadd.xlane.f32.xlu0 %v1223_v38 }
 0x4e2   :  { %1393 = vrot.lane.b32.xlu1 %v4783_v61, %s4625_s30 }
 0x4e6   :  { %4498 = vrot.lane.b32.xlu1 %v4497_v31, %s5364_s12 }
 0x4ec   :  { %1228 = vrot.lane.b32.xlu0 %v4783_v61, %s4624_s29 }
 0x4f0   :  { %1558 = vrot.lane.b32.xlu0 %v4783_v61, %s4627_s11 }
 0x4f4   :  { %4503 = vrot.lane.b32.xlu0 %v4502_v14, %s5364_s12 }
 0x51d   :  { %v383_v41 = vpop.xlane.xlu1 %382 }
 0x51e   :  { %4541 = vrcp.f32 %v383_v41 }
 0x521   :  { %v1064_v48 = vpop.permute.xlu1 %1063 }
 0x528   :  { %v4542_v42 = vpop.eup %4541 }
 0x529   :  { %v385_v44 = vmul.f32 %v4542_v42, %v4866_v56 }
 0x52a   :  { %v548_v45 = vpop.xlane.xlu0 %547 }
 0x52b   :  { %4543 = vrcp.f32 %v548_v45  ;;  %4152 = vmatmul.mubr.msk.f32.vlgmr.msra.gmra.mrb[4].mxu1 %vm299_vm6, %v385_v44 }
 0x52c   :  { %4160 = vmatpush3.msra.mxu1 %v552_v39  ;;  %4161 = vmatprep.mubr.msk.f32.mxu1 %vm4616_vm5, %v4615_v58 }
 0x52d   :  { %4169 = vmatprep.subr.mxu1 %v4615_v58 }
 0x52e   :  { %v882_v50 = vpop.permute.xlu0 %881 }
 0x535   :  { %v4544_v46 = vpop.eup %4543 }
 0x536   :  { %v550_v61 = vmul.f32 %v4544_v46, %v4870_v1 }
 0x538   :  { %4162 = vmatmul.mubr.msk.f32.vlgmr.msra.gmra.mrb[6].mxu1 %vm299_vm6, %v550_v61 }
 0x539   :  { %4170 = vmatpush3.msra.mxu1 %v717_v40  ;;  %4171 = vmatprep.mubr.msk.f32.mxu1 %vm4616_vm5, %v4615_v58 }
 0x53a   :  { %4179 = vmatprep.subr.mxu1 %v4615_v58 }
 0x552   :  { %v713_v49 = vpop.xlane.xlu1 %712 }
 0x553   :  { %4545 = vrcp.f32 %v713_v49 }
 0x556   :  { %v1060_v54 = vpop.xlane.xlu1 %1059 }
 0x55a   :  { %v1390_v62 = vpop.xlane.xlu1 %1389 }
 0x55d   :  { %v4546_v52 = vpop.eup %4545 }
 0x55e   :  { %v715_v53 = vmul.f32 %v4546_v52, %v4530_v22  ;;  %v1555_v1 = vpop.xlane.xlu1 %1554 }
 0x55f   :  { %v878_v56 = vpop.xlane.xlu0 %877 }
 0x560   :  { %4547 = vrcp.f32 %v878_v56  ;;  %4172 = vmatmul.mubr.msk.f32.vlgmr.msra.gmra.mrb[8].mxu1 %vm299_vm6, %v715_v53 }
 0x561   :  { %4180 = vmatpush3.msra.mxu1 %v882_v50  ;;  %4181 = vmatprep.mubr.msk.f32.mxu1 %vm4616_vm5, %v4615_v58  ;;  %4549 = vrcp.f32 %v1060_v54 }
 0x562   :  { %4189 = vmatprep.subr.mxu1 %v4615_v58  ;;  %v1394_v9 = vpop.permute.xlu1 %1393 }
 0x563   :  { %v1225_v60 = vpop.xlane.xlu0 %1224 }
 0x564   :  { %4551 = vrcp.f32 %v1225_v60 }
 0x565   :  { %4553 = vrcp.f32 %v1390_v62 }
 0x566   :  { %4555 = vrcp.f32 %v1555_v1  ;;  %v4499_v15 = vpop.permute.xlu1 %4498 }
 0x567   :  { %v1229_v6 = vpop.permute.xlu0 %1228  ;;  %v4501_v18 = vunpack.i.h.bf16 %v4499_v15  ;;  %v4500_v19 = vunpack.i.l.bf16 %v4499_v15  ;;  %v52_v15 = vld [vmem:[%s5351_s6 + $0x10] sm:$0xff] }
 0x569   :  { %v4405_v20 = vpack.c.bf16 %v4501_v18, %v4500_v19  ;;  %v53_v18 = vld [vmem:[%s5351_s6 + $0x18] sm:$0xff] }
 0x56a   :  { %v4548_v0 = vpop.eup %4547  ;;  %v4417_v19 = vpack.c.bf16 %v53_v18, %v52_v15 }
 0x56b   :  { %v880_v2 = vmul.f32 %v4548_v0, %v4538_v34  ;;  %v4550_v3 = vpop.eup %4549  ;;  %v1559_v12 = vpop.permute.xlu0 %1558  ;;  %4406 = vmatprep.subr.bf16.mxu0 %v4405_v20 }
 0x56c   :  { %v1062_v4 = vmul.f32 %v4550_v3, %v4881_v63  ;;  %4408 = vmatpush3.bf16.msra.mxu0 %v4405_v20  ;;  %v60_v20 = vld [vmem:[%s5352_s8] sm:$0xff] }
 0x56d   :  { %4182 = vmatmul.mubr.msk.f32.vlgmr.msra.gmra.mrb[10].mxu1 %vm299_vm6, %v880_v2 }
 0x56e   :  { %4190 = vmatpush3.msra.mxu1 %v1064_v48  ;;  %4191 = vmatprep.mubr.msk.f32.mxu1 %vm4616_vm5, %v4615_v58  ;;  %v4552_v5 = vpop.eup %4551 }
 0x56f   :  { %4199 = vmatprep.subr.mxu1 %v4615_v58  ;;  %v1227_v7 = vmul.f32 %v4552_v5, %v4540_v37  ;;  %v4554_v8 = vpop.eup %4553  ;;  %v4504_v23 = vpop.permute.xlu0 %4503 }
 0x570   :  { %v1392_v10 = vmul.f32 %v4554_v8, %v4885_v30  ;;  %v4556_v11 = vpop.eup %4555  ;;  %v4506_v24 = vunpack.i.h.bf16 %v4504_v23  ;;  %v4505_v63 = vunpack.i.l.bf16 %v4504_v23 }
 0x571   :  { %4192 = vmatmul.mubr.msk.f32.vlgmr.msra.gmra.mrb[12].mxu1 %vm299_vm6, %v1062_v4  ;;  %v1557_v13 = vmul.f32 %v4556_v11, %v4889_v33 }
 0x572   :  { %4200 = vmatpush3.msra.mxu1 %v1229_v6  ;;  %4201 = vmatprep.mubr.msk.f32.mxu1 %vm4616_vm5, %v4615_v58  ;;  %v4409_v27 = vpack.c.bf16 %v4506_v24, %v4505_v63  ;;  %v63_v24 = vld [vmem:[%s5352_s8 + $0x18] sm:$0xff] }
 0x573   :  { %4209 = vmatprep.subr.mxu1 %v4615_v58 }
 0x574   :  { %4410 = vmatprep.subr.bf16.mxu0 %v4409_v27 }
 0x575   :  { %4202 = vmatmul.mubr.msk.f32.vlgmr.msra.gmra.mrb[14].mxu1 %vm299_vm6, %v1227_v7  ;;  %4412 = vmatpush3.bf16.msra.mxu0 %v4409_v27  ;;  %v64_v27 = vld [vmem:[%s5352_s8 + $0x20] sm:$0xff] }
 0x576   :  { %4210 = vmatpush3.msra.mxu1 %v1394_v9  ;;  %4211 = vmatprep.mubr.msk.f32.mxu1 %vm4616_vm5, %v4615_v58 }
 0x577   :  { %4219 = vmatprep.subr.mxu1 %v4615_v58 }
 0x579   :  { %4212 = vmatmul.mubr.msk.f32.vlgmr.msra.gmra.mrb[16].mxu1 %vm299_vm6, %v1392_v10 }
 0x57a   :  { %4220 = vmatpush3.msra.mxu1 %v1559_v12  ;;  %4221 = vmatprep.mubr.msk.f32.mxu1 %vm4616_vm5, %v4615_v58 }
 0x57d   :  { %4222 = vmatmul.mubr.msk.f32.vlgmr.msra.gmra.mrb[18].mxu1 %vm299_vm6, %v1557_v13  ;;  %v51_v13 = vld [vmem:[%s5351_s6 + $0x8] sm:$0xff] }
 0x5fe   :  { %v458_v21 = vpop.f32.mrb[4].mxu1 }
 0x5ff   :  { %v4153_v22 = vpop.f32.mrb[5].mxu1 }
 0x600   :  { %v62_v22 = vld [vmem:[%s5352_s8 + $0x10] sm:$0xff] }
 0x601   :  { %v4425_v63 = vpack.c.bf16 %v63_v24, %v62_v22  ;;  %v5039_v22 = vld [vmem:[%s5349_s2 + $0x28] sm:$0xff]  ;;  %v5046_v24 = vld [vmem:[%s5349_s2 + $0x30] sm:$0xff] }
 0x60b   :  { %v623_v25 = vpop.f32.mrb[6].mxu1 }
 0x60c   :  { %958 = vrot.lane.b32.xlu1 %v623_v25, %s5362_s13  ;;  %v4163_v26 = vpop.f32.mrb[7].mxu1  ;;  %v65_v25 = vld [vmem:[%s5352_s8 + $0x28] sm:$0xff] }
 0x60d   :  { %v4429_v26 = vpack.c.bf16 %v65_v25, %v64_v27 }
 0x633   :  { %v788_v28 = vpop.f32.mrb[8].mxu1 }
 0x634   :  { %962 = vrot.lane.b32.xlu0 %v788_v28, %s5360_s14  ;;  %v4173_v29 = vpop.f32.mrb[9].mxu1 }
 0x640   :  { %v953_v31 = vpop.f32.mrb[10].mxu1 }
 0x641   :  { %966 = vrot.lane.b32.xlu0 %v953_v31, %s5358_s15  ;;  %v4183_v30 = vpop.f32.mrb[11].mxu1  ;;  %v1777_v31 = vlaneseq }
 0x644   :  { %v1135_v32 = vpop.f32.mrb[12].mxu1 }
 0x645   :  { %v4193_v33 = vpop.f32.mrb[13].mxu1 }
 0x648   :  { %v1300_v34 = vpop.f32.mrb[14].mxu1 }
 0x649   :  { %1635 = vrot.lane.b32.xlu1 %v1300_v34, %s5362_s13  ;;  %v4203_v35 = vpop.f32.mrb[15].mxu1  ;;  %v4993_v34 = vshrl.u32 %v1777_v31, 7 }
 0x64c   :  { %v1465_v36 = vpop.f32.mrb[16].mxu1 }
 0x64d   :  { %1639 = vrot.lane.b32.xlu1 %v1465_v36, %s5360_s14  ;;  %v4213_v37 = vpop.f32.mrb[17].mxu1  ;;  %v1779_v36 = vsub.s32 0, %v4993_v34 }
 0x64e   :  { %v4999_v37 = vld [vmem:[%s5353_s4] sm:$0x1f] }
 0x650   :  { %v1630_v38 = vpop.f32.mrb[18].mxu1 }
 0x651   :  { %1643 = vrot.lane.b32.xlu0 %v1630_v38, %s5358_s15  ;;  %v4223_v39 = vpop.f32.mrb[19].mxu1  ;;  %1665 = vrot.lane.b32.xlu1 %v4780_v59, %s5364_s12  ;;  %v5004_v38 = vld [vmem:[%s5354_s5] sm:$0x1f] }
 0x652   :  { %v1780_v39 = vrot.slane %v4999_v37, %v1779_v36 }
 0x67e   :  { %v959_v40 = vpop.permute.xlu1 %958 }
 0x67f   :  { %v969_v42 = vsel %vm299_vm6, %v458_v21, %v959_v40  ;;  %v61_v21 = vld [vmem:[%s5352_s8 + $0x8] sm:$0xff] }
 0x680   :  { %v4421_v23 = vpack.c.bf16 %v61_v21, %v60_v20  ;;  %v5034_v21 = vld [vmem:[%s5349_s2 + $0x20] sm:$0xff] }
 0x682   :  { %4422 = vmatprep.subr.bf16.mxu0 %v4421_v23 }
 0x6a6   :  { %v963_v41 = vpop.permute.xlu0 %962 }
 0x6a7   :  { %v971_v44 = vsel %vm970_vm7, %v969_v42, %v963_v41  ;;  %v1786_v42 = vrot.slane %v5004_v38, %v1779_v36 }
 0x6b3   :  { %v967_v45 = vpop.permute.xlu0 %966 }
 0x6b4   :  { %v973_v46 = vsel %vm972_vm8, %v971_v44, %v967_v45 }
 0x6b5   :  { %4232 = vmatprep.mubr.msk.f32.mxu0 %vm151_vm0, %v973_v46 }
 0x6bb   :  { %v1636_v61 = vpop.permute.xlu1 %1635 }
 0x6bc   :  { %v1646_v49 = vsel %vm299_vm6, %v1135_v32, %v1636_v61 }
 0x6bf   :  { %v1640_v48 = vpop.permute.xlu1 %1639 }
 0x6c0   :  { %v1647_v50 = vsel %vm970_vm7, %v1646_v49, %v1640_v48 }
 0x6c3   :  { %v1644_v59 = vpop.permute.xlu0 %1643  ;;  %v1666_v53 = vpop.permute.xlu1 %1665 }
 0x6c4   :  { %v1648_v52 = vsel %vm972_vm8, %v1647_v50, %v1644_v59  ;;  %v66_v50 = vld [vmem:[%s5352_s8 + $0x30] sm:$0xff]  ;;  %v67_v59 = vld [vmem:[%s5352_s8 + $0x38] sm:$0xff] }
 0x6c5   :  { %4233 = vmatmul.mubr.msk.f32.vlgmr.msra.gmra.mrb[14].mxu0 %vm151_vm0, %v1648_v52  ;;  %v4433_v52 = vpack.c.bf16 %v67_v59, %v66_v50 }
 0x6c6   :  { %4424 = vmatpush3.bf16.msra.mxu0 %v4421_v23  ;;  %v4437_v23 = vpack.c.bf16 %v5039_v22, %v5034_v21 }
 0x6c7   :  { %4426 = vmatprep.subr.bf16.mxu0 %v4425_v63 }
 0x6ca   :  { %4428 = vmatpush3.bf16.msra.mxu0 %v4425_v63  ;;  %v5051_v63 = vld [vmem:[%s5349_s2 + $0x38] sm:$0xff] }
 0x6cb   :  { %4430 = vmatprep.subr.bf16.mxu0 %v4429_v26  ;;  %v4512_v27 = vpack.i.bf16 %v5051_v63, %v5046_v24  ;;  %v4441_v25 = vpack.c.bf16 %v5051_v63, %v5046_v24 }
 0x6ce   :  { %4432 = vmatpush3.bf16.msra.mxu0 %v4429_v26 }
 0x6cf   :  { %4434 = vmatprep.subr.bf16.mxu0 %v4433_v52 }
 0x6d2   :  { %4436 = vmatpush3.bf16.msra.mxu0 %v4433_v52 }
 0x6d3   :  { %4286 = vmatprep.subr.mxu0 %v4615_v58 }
 0x798   :  { %v4234_v54 = vpop.f32.mrb[14].mxu0 }
 0x799   :  { %v1746_v56 = vadd.f32 %v4234_v54, %v1666_v53  ;;  %v1740_v60 = vpop.f32.mrb[15].mxu0 }
 0x79a   :  { %v1741_v62 = vadd.f32 %v1740_v60, %v1666_v53  ;;  %v3970_v53 = vld [vmem:[%s5355_s7] ss:$0 sm:$0xff] }
 0x79b   :  { %v1750_v0 = vadd.f32 %v1746_v56, %v4767_v57 }
 0x79c   :  { %v1749_v1 = vadd.f32 %v1741_v62, %v4762_v55  ;;  %v50_v55 = vld [vmem:[%s5351_s6] sm:$0xff] }
 0x79d   :  { %v1754_v2 = vsel %vm151_vm0, %v1750_v0, 0.0  ;;  %v4413_v14 = vpack.c.bf16 %v51_v13, %v50_v55 }
 0x79e   :  { %1755 = vadd.xlane.f32.xlu1 %v1754_v2  ;;  %v1751_v3 = vsel %vm151_vm0, %v1749_v1, 0.0  ;;  %v3973_v2 = vld [vmem:[%s5356_s9] ss:$0 sm:$0xff] }
 0x79f   :  { %1752 = vadd.xlane.f32.xlu0 %v1751_v3  ;;  %4414 = vmatprep.subr.bf16.mxu1 %v4413_v14 }
 0x7a0   :  { %4416 = vmatpush3.bf16.msra.mxu1 %v4413_v14 }
 0x7a1   :  { %4418 = vmatprep.subr.bf16.mxu1 %v4417_v19 }
 0x7a4   :  { %4420 = vmatpush3.bf16.msra.mxu1 %v4417_v19 }
 0x7a5   :  { %4438 = vmatprep.subr.bf16.mxu1 %v4437_v23 }
 0x82b   :  { %v1756_v4 = vpop.xlane.xlu1 %1755 }
 0x82c   :  { %v1758_v5 = vmul.f32 0.03125, %v1756_v4  ;;  %v1753_v6 = vpop.xlane.xlu0 %1752 }
 0x82d   :  { %v1757_v7 = vmul.f32 0.03125, %v1753_v6 }
 0x82e   :  { %v1760_v8 = vsub.f32 %v1750_v0, %v1758_v5 }
 0x82f   :  { %v1759_v9 = vsub.f32 %v1749_v1, %v1757_v7 }
 0x830   :  { %v1762_v12 = vmul.f32 %v1760_v8, %v1760_v8 }
 0x831   :  { %v1761_v10 = vmul.f32 %v1759_v9, %v1759_v9 }
 0x832   :  { %v1766_v57 = vsel %vm151_vm0, %v1762_v12, 0.0 }
 0x833   :  { %v1763_v11 = vsel %vm151_vm0, %v1761_v10, 0.0 }
 0x834   :  { %1764 = vadd.xlane.f32.xlu0 %v1763_v11 }
 0x838   :  { %1767 = vadd.xlane.f32.xlu0 %v1766_v57 }
 0x8c1   :  { %v1765_v28 = vpop.xlane.xlu0 %1764 }
 0x8c2   :  { %v1769_v29 = vmul.f32 0.03125, %v1765_v28 }
 0x8c4   :  { %v1771_v30 = vadd.f32 1e-05, %v1769_v29 }
 0x8c5   :  { %v1768_v32 = vpop.xlane.xlu0 %1767 }
 0x8c6   :  { %4557 = vrsqrt.f32 %v1771_v30  ;;  %v1770_v33 = vmul.f32 0.03125, %v1768_v32 }
 0x8c8   :  { %v1772_v35 = vadd.f32 1e-05, %v1770_v33  ;;  %v1996_v33 = vsub.s32 1, %v4993_v34 }
 0x8ca   :  { %4559 = vrsqrt.f32 %v1772_v35  ;;  %v1997_v35 = vrot.slane %v4999_v37, %v1996_v33 }
 0x8d0   :  { %v4558_v40 = vpop.eup %4557 }
 0x8d1   :  { %v1775_v41 = vmul.f32 %v4558_v40, %v1759_v9 }
 0x8d3   :  { %v1781_v44 = vmul.f32 %v1780_v39, %v1775_v41 }
 0x8d4   :  { %v4560_v45 = vpop.eup %4559 }
 0x8d5   :  { %v1776_v46 = vmul.f32 %v4560_v45, %v1760_v8  ;;  %v1787_v61 = vadd.f32 %v1786_v42, %v1781_v44 }
 0x8d7   :  { %v1782_v48 = vmul.f32 %v1780_v39, %v1776_v46  ;;  %4243 = vmatprep.mubr.msk.f32.mxu1 %vm151_vm0, %v1787_v61 }
 0x8d9   :  { %v1788_v49 = vadd.f32 %v1786_v42, %v1782_v48  ;;  %v2003_v42 = vrot.slane %v5004_v38, %v1996_v33  ;;  %v5074_v48 = vld [vmem:[%s5350_s3 + $0x1] ss:$0 sm:$0xff]  ;;  %s5366_s3 = smov 32  }
 0x8db   :  { %4244 = vmatmul.mubr.msk.f32.vlgmr.msra.gmra.mrb[20].mxu1 %vm151_vm0, %v1788_v49 }
 0x8dc   :  { %4440 = vmatpush3.bf16.msra.mxu1 %v4437_v23 }
 0x8dd   :  { %4442 = vmatprep.subr.bf16.mxu1 %v4441_v25 }
 0x8e0   :  { %4444 = vmatpush3.bf16.msra.mxu1 %v4441_v25 }
 0x8e1   :  { %4276 = vmatprep.subr.mxu1 %v4615_v58 }
 0x9ae   :  { %v4245_v54 = vpop.f32.mrb[20].mxu1 }
 0x9af   :  { %v1873_v56 = vadd.f32 %v4245_v54, %v3970_v53  ;;  %v1867_v60 = vpop.f32.mrb[21].mxu1 }
 0x9b0   :  { %v1868_v62 = vadd.f32 %v3970_v53, %v1867_v60 }
 0x9b1   :  { %v1877_v1 = vmax.f32 %v1873_v56, 0.0 }
 0x9b2   :  { %v1876_v0 = vmax.f32 %v1868_v62, 0.0 }
 0x9b4   :  { %4262 = vmatprep.mubr.msk.f32.mxu0 %vm1884_vm9, %v1876_v0 }
 0x9b5   :  { %4263 = vmatmul.mubr.msk.f32.vlgmr.msra.gmra.mrb[16].mxu0 %vm1884_vm9, %v1877_v1 }
 0x9b6   :  { %4288 = vmatprep.mubr.msk.f32.mxu0 %vm4616_vm5, %v4615_v58 }
 0xa88   :  { %v4264_v3 = vpop.f32.mrb[16].mxu0 }
 0xa89   :  { %v1963_v4 = vadd.f32 %v4264_v3, %v3973_v2  ;;  %v1957_v5 = vpop.f32.mrb[17].mxu0 }
 0xa8a   :  { %v1958_v6 = vadd.f32 %v3973_v2, %v1957_v5 }
 0xa8b   :  { %v1967_v7 = vadd.f32 %v1963_v4, %v1788_v49 }
 0xa8c   :  { %v1966_v8 = vadd.f32 %v1958_v6, %v1787_v61 }
 0xa8d   :  { %v1971_v9 = vsel %vm151_vm0, %v1967_v7, 0.0 }
 0xa8e   :  { %1972 = vadd.xlane.f32.xlu1 %v1971_v9  ;;  %v1968_v10 = vsel %vm151_vm0, %v1966_v8, 0.0 }
 0xa8f   :  { %1969 = vadd.xlane.f32.xlu0 %v1968_v10 }
 0xb1b   :  { %v1973_v11 = vpop.xlane.xlu1 %1972 }
 0xb1c   :  { %v1975_v12 = vmul.f32 0.03125, %v1973_v11  ;;  %v1970_v57 = vpop.xlane.xlu0 %1969 }
 0xb1d   :  { %v1974_v55 = vmul.f32 0.03125, %v1970_v57 }
 0xb1e   :  { %v1977_v13 = vsub.f32 %v1967_v7, %v1975_v12 }
 0xb1f   :  { %v1976_v14 = vsub.f32 %v1966_v8, %v1974_v55 }
 0xb20   :  { %v1979_v15 = vmul.f32 %v1977_v13, %v1977_v13 }
 0xb21   :  { %v1978_v18 = vmul.f32 %v1976_v14, %v1976_v14 }
 0xb22   :  { %v1983_v19 = vsel %vm151_vm0, %v1979_v15, 0.0 }
 0xb23   :  { %1984 = vadd.xlane.f32.xlu1 %v1983_v19  ;;  %v1980_v20 = vsel %vm151_vm0, %v1978_v18, 0.0 }
 0xb24   :  { %1981 = vadd.xlane.f32.xlu0 %v1980_v20 }
 0xbb0   :  { %v1985_v26 = vpop.xlane.xlu1 %1984 }
 0xbb1   :  { %v1987_v28 = vmul.f32 0.03125, %v1985_v26  ;;  %v1982_v29 = vpop.xlane.xlu0 %1981 }
 0xbb2   :  { %v1986_v31 = vmul.f32 0.03125, %v1982_v29 }
 0xbb3   :  { %v1989_v30 = vadd.f32 1e-05, %v1987_v28 }
 0xbb4   :  { %v1988_v32 = vadd.f32 1e-05, %v1986_v31 }
 0xbb5   :  { %4561 = vrsqrt.f32 %v1989_v30 }
 0xbb6   :  { %4563 = vrsqrt.f32 %v1988_v32 }
 0xbbf   :  { %v4562_v36 = vpop.eup %4561 }
 0xbc0   :  { %v4564_v39 = vpop.eup %4563  ;;  %v1993_v40 = vmul.f32 %v4562_v36, %v1977_v13 }
 0xbc1   :  { %v1992_v41 = vmul.f32 %v4564_v39, %v1976_v14 }
 0xbc2   :  { %v1999_v44 = vmul.f32 %v1997_v35, %v1993_v40 }
 0xbc3   :  { %v1998_v45 = vmul.f32 %v1997_v35, %v1992_v41 }
 0xbc4   :  { %v5063_v61 = vadd.f32 %v2003_v42, %v1999_v44 }
 0xbc5   :  { %v5061_v46 = vadd.f32 %v2003_v42, %v1998_v45 }
 0xbc7   :  { %4273 = vmatprep.mubr.msk.f32.mxu1 %vm151_vm0, %v5061_v46 }
 0xbc8   :  { %4274 = vmatmul.mubr.msk.f32.vlgmr.msra.gmra.mrb[22].mxu1 %vm151_vm0, %v5063_v61 }
 0xbc9   :  { %4278 = vmatprep.mubr.msk.f32.mxu1 %vm4616_vm5, %v4615_v58 }
 0xc9b   :  { %v4275_v49 = vpop.f32.mrb[22].mxu1 }
 0xc9c   :  { %v2084_v50 = vpop.f32.mrb[23].mxu1  ;;  %v5090_v53 = vadd.f32 %v4275_v49, %v5074_v48 }
 0xc9d   :  { %v5077_v59 = vadd.f32 %v5074_v48, %v2084_v50 }
 0xc9e   :  { %v2094_v54 = vmul.f32 0.35355338, %v5090_v53 }
 0xc9f   :  { %2262 = vrot.lane.b32.xlu1 %v5077_v59, %s4619_s24  ;;  %2096 = vrot.lane.b32.xlu0 %v5077_v59, %s4617_s22  ;;  %v2093_v52 = vmul.f32 0.35355338, %v5077_v59 }
 0xca3   :  { %2425 = vrot.lane.b32.xlu0 %v2093_v52, %s4620_s25  ;;  %2260 = vrot.lane.b32.xlu1 %v2093_v52, %s4618_s23 }
 0xca7   :  { %2590 = vrot.lane.b32.xlu0 %v2093_v52, %s4622_s27  ;;  %2427 = vrot.lane.b32.xlu1 %v5077_v59, %s4621_s26 }
 0xcab   :  { %2937 = vrot.lane.b32.xlu0 %v5090_v53, %s4619_s24  ;;  %2592 = vrot.lane.b32.xlu1 %v5077_v59, %s4623_s28  ;;  %s5369_s24 = smov 24  }
 0xcaf   :  { %3102 = vrot.lane.b32.xlu0 %v5090_v53, %s4621_s26  ;;  %2771 = vrot.lane.b32.xlu1 %v5090_v53, %s4617_s22  ;;  %s5367_s22 = smov 8  }
 0xcb3   :  { %3267 = vrot.lane.b32.xlu0 %v5090_v53, %s4623_s28  ;;  %2935 = vrot.lane.b32.xlu1 %v2094_v54, %s4618_s23  ;;  %s5368_s23 = smov 16  }
 0xcb7   :  { %3100 = vrot.lane.b32.xlu1 %v2094_v54, %s4620_s25 }
 0xcbb   :  { %3265 = vrot.lane.b32.xlu1 %v2094_v54, %s4622_s27 }
 0xd11   :  { %v2263_v56 = vpop.permute.xlu1 %2262  ;;  %v2097_v60 = vpop.permute.xlu0 %2096 }
 0xd12   :  { %4277 = vmatpush3.xpose.msk.msra.mxu1 %vm299_vm6, %v2097_v60  ;;  %4287 = vmatpush3.xpose.msk.msra.mxu0 %vm299_vm6, %v2263_v56 }
 0xd13   :  { %4296 = vmatprep.subr.mxu0 %v4615_v58  ;;  %4281 = vmatprep.subr.mxu1 %v4615_v58 }
 0xd15   :  { %v2426_v62 = vpop.permute.xlu0 %2425  ;;  %v2261_v0 = vpop.permute.xlu1 %2260  ;;  %4279 = vmatmul.mubr.msk.f32.vlgmr.msra.gmra.mrb[24].mxu1 %vm299_vm6, %v2093_v52 }
 0xd16   :  { %4289 = vmatmul.mubr.msk.f32.vlgmr.msra.gmra.mrb[18].mxu0 %vm299_vm6, %v2261_v0  ;;  %4283 = vmatprep.mubr.msk.f32.mxu1 %vm4616_vm5, %v4615_v58 }
 0xd17   :  { %4298 = vmatprep.mubr.msk.f32.mxu0 %vm4616_vm5, %v4615_v58 }
 0xd19   :  { %v2428_v1 = vpop.permute.xlu1 %2427  ;;  %v2591_v2 = vpop.permute.xlu0 %2590 }
 0xd1a   :  { %4297 = vmatpush3.xpose.msk.msra.mxu0 %vm299_vm6, %v2428_v1 }
 0xd1b   :  { %4306 = vmatprep.subr.mxu0 %v4615_v58 }
 0xd1d   :  { %4299 = vmatmul.mubr.msk.f32.vlgmr.msra.gmra.mrb[20].mxu0 %vm299_vm6, %v2426_v62  ;;  %v2593_v3 = vpop.permute.xlu1 %2592  ;;  %v2938_v4 = vpop.permute.xlu0 %2937 }
 0xd1e   :  { %4307 = vmatpush3.xpose.msk.msra.mxu0 %vm299_vm6, %v2593_v3  ;;  %4308 = vmatprep.mubr.msk.f32.mxu0 %vm4616_vm5, %v4615_v58 }
 0xd1f   :  { %4316 = vmatprep.subr.mxu0 %v4615_v58 }
 0xd21   :  { %4309 = vmatmul.mubr.msk.f32.vlgmr.msra.gmra.mrb[22].mxu0 %vm299_vm6, %v2591_v2  ;;  %v2772_v5 = vpop.permute.xlu1 %2771  ;;  %v3103_v7 = vpop.permute.xlu0 %3102 }
 0xd22   :  { %4317 = vmatpush3.xpose.msk.msra.mxu0 %vm299_vm6, %v2772_v5  ;;  %4318 = vmatprep.mubr.msk.f32.mxu0 %vm4616_vm5, %v4615_v58 }
 0xd23   :  { %4326 = vmatprep.subr.mxu0 %v4615_v58 }
 0xd25   :  { %4319 = vmatmul.mubr.msk.f32.vlgmr.msra.gmra.mrb[24].mxu0 %vm299_vm6, %v2094_v54  ;;  %v2936_v6 = vpop.permute.xlu1 %2935  ;;  %v3268_v9 = vpop.permute.xlu0 %3267 }
 0xd26   :  { %4327 = vmatpush3.xpose.msk.msra.mxu0 %vm299_vm6, %v2938_v4  ;;  %4328 = vmatprep.mubr.msk.f32.mxu0 %vm4616_vm5, %v4615_v58 }
 0xd27   :  { %4336 = vmatprep.subr.mxu0 %v4615_v58 }
 0xd29   :  { %4329 = vmatmul.mubr.msk.f32.vlgmr.msra.gmra.mrb[26].mxu0 %vm299_vm6, %v2936_v6  ;;  %v3101_v8 = vpop.permute.xlu1 %3100 }
 0xd2a   :  { %4337 = vmatpush3.xpose.msk.msra.mxu0 %vm299_vm6, %v3103_v7  ;;  %4338 = vmatprep.mubr.msk.f32.mxu0 %vm4616_vm5, %v4615_v58 }
 0xd2b   :  { %4346 = vmatprep.subr.mxu0 %v4615_v58 }
 0xd2d   :  { %4339 = vmatmul.mubr.msk.f32.vlgmr.msra.gmra.mrb[28].mxu0 %vm299_vm6, %v3101_v8  ;;  %v3266_v10 = vpop.permute.xlu1 %3265 }
 0xd2e   :  { %4347 = vmatpush3.xpose.msk.msra.mxu0 %vm299_vm6, %v3268_v9  ;;  %4348 = vmatprep.mubr.msk.f32.mxu0 %vm4616_vm5, %v4615_v58 }
 0xd31   :  { %4349 = vmatmul.mubr.msk.f32.vlgmr.msra.gmra.mrb[30].mxu0 %vm299_vm6, %v3266_v10 }
 0xde8   :  { %v2169_v11 = vpop.f32.mrb[24].mxu1 }
 0xde9   :  { %v4280_v12 = vpop.f32.mrb[25].mxu1  ;;  %v2334_v57 = vpop.f32.mrb[18].mxu0  ;;  %v2173_v55 = vsel %vm299_vm6, %v2169_v11, -inf }
 0xdea   :  { %v4290_v13 = vpop.f32.mrb[19].mxu0  ;;  %2174 = vmax.xlane.f32.xlu0 %v2173_v55  ;;  %v2338_v14 = vsel %vm299_vm6, %v2334_v57, -inf }
 0xdeb   :  { %2339 = vmax.xlane.f32.xlu1 %v2338_v14 }
 0xdf0   :  { %v2499_v15 = vpop.f32.mrb[20].mxu0 }
 0xdf1   :  { %v4300_v18 = vpop.f32.mrb[21].mxu0  ;;  %v2503_v19 = vsel %vm299_vm6, %v2499_v15, -inf }
 0xdf2   :  { %2504 = vmax.xlane.f32.xlu0 %v2503_v19 }
 0xdf4   :  { %v2664_v20 = vpop.f32.mrb[22].mxu0 }
 0xdf5   :  { %v4310_v23 = vpop.f32.mrb[23].mxu0  ;;  %v2668_v25 = vsel %vm299_vm6, %v2664_v20, -inf }
 0xdf6   :  { %2669 = vmax.xlane.f32.xlu0 %v2668_v25 }
 0xdf8   :  { %v2844_v26 = vpop.f32.mrb[24].mxu0 }
 0xdf9   :  { %v4320_v28 = vpop.f32.mrb[25].mxu0  ;;  %v2848_v29 = vsel %vm299_vm6, %v2844_v26, -inf }
 0xdfa   :  { %2849 = vmax.xlane.f32.xlu0 %v2848_v29 }
 0xdfc   :  { %v3009_v31 = vpop.f32.mrb[26].mxu0 }
 0xdfd   :  { %v4330_v30 = vpop.f32.mrb[27].mxu0  ;;  %v3013_v32 = vsel %vm299_vm6, %v3009_v31, -inf }
 0xdfe   :  { %3014 = vmax.xlane.f32.xlu1 %v3013_v32 }
 0xe00   :  { %v3174_v33 = vpop.f32.mrb[28].mxu0 }
 0xe01   :  { %v4340_v35 = vpop.f32.mrb[29].mxu0  ;;  %v3178_v36 = vsel %vm299_vm6, %v3174_v33, -inf }
 0xe02   :  { %3179 = vmax.xlane.f32.xlu0 %v3178_v36 }
 0xe04   :  { %v3339_v39 = vpop.f32.mrb[30].mxu0 }
 0xe05   :  { %v4350_v40 = vpop.f32.mrb[31].mxu0  ;;  %v3343_v41 = vsel %vm299_vm6, %v3339_v39, -inf }
 0xe0f   :  { %2184 = vrot.lane.b32.xlu1 %v5077_v59, %s4626_s0 }
 0xe33   :  { %3344 = vmax.xlane.f32.xlu1 %v3343_v41 }
 0xe44   :  { %2514 = vrot.lane.b32.xlu1 %v5077_v59, %s4625_s30 }
 0xe48   :  { %2679 = vrot.lane.b32.xlu1 %v5077_v59, %s4627_s11 }
 0xe4c   :  { %2859 = vrot.lane.b32.xlu1 %v5090_v53, %s4626_s0 }
 0xe77   :  { %v2175_v42 = vpop.xlane.xlu0 %2174 }
 0xe78   :  { %v2176_v44 = vsub.f32 %v2169_v11, %v2175_v42  ;;  %v2340_v45 = vpop.xlane.xlu1 %2339 }
 0xe79   :  { %v2341_v49 = vsub.f32 %v2334_v57, %v2340_v45 }
 0xe7a   :  { %v2177_v50 = vmul.f32 1.442695, %v2176_v44 }
 0xe7b   :  { %v2342_v52 = vmul.f32 1.442695, %v2341_v49 }
 0xe7c   :  { %4565 = vpow2.f32 %v2177_v50 }
 0xe7d   :  { %4567 = vpow2.f32 %v2342_v52 }
 0xe7f   :  { %v2505_v54 = vpop.xlane.xlu0 %2504 }
 0xe80   :  { %v2506_v8 = vsub.f32 %v2499_v15, %v2505_v54 }
 0xe82   :  { %v2507_v10 = vmul.f32 1.442695, %v2506_v8 }
 0xe83   :  { %v2670_v56 = vpop.xlane.xlu0 %2669 }
 0xe84   :  { %v2671_v60 = vsub.f32 %v2664_v20, %v2670_v56 }
 0xe86   :  { %v4566_v62 = vpop.eup %4565  ;;  %v2672_v0 = vmul.f32 1.442695, %v2671_v60 }
 0xe87   :  { %v5159_v1 = vpop.eup %4567  ;;  %v2179_v2 = vsel %vm299_vm6, %v4566_v62, 0.0  ;;  %v2850_v9 = vpop.xlane.xlu0 %2849 }
 0xe88   :  { %4569 = vpow2.f32 %v2672_v0  ;;  %2180 = vadd.xlane.f32.xlu0 %v2179_v2  ;;  %v2344_v3 = vsel %vm299_vm6, %v5159_v1, 0.0  ;;  %v2851_v11 = vsub.f32 %v2844_v26, %v2850_v9 }
 0xe89   :  { %2345 = vadd.xlane.f32.xlu1 %v2344_v3  ;;  %4571 = vpow2.f32 %v2507_v10 }
 0xe8a   :  { %v2852_v57 = vmul.f32 1.442695, %v2851_v11 }
 0xe8b   :  { %v3015_v4 = vpop.xlane.xlu1 %3014 }
 0xe8c   :  { %4573 = vpow2.f32 %v2852_v57  ;;  %v3016_v13 = vsub.f32 %v3009_v31, %v3015_v4 }
 0xe8e   :  { %v3017_v18 = vmul.f32 1.442695, %v3016_v13 }
 0xe8f   :  { %v2185_v5 = vpop.permute.xlu1 %2184  ;;  %v3180_v12 = vpop.xlane.xlu0 %3179 }
 0xe90   :  { %4282 = vmatpush3.msra.mxu1 %v2185_v5  ;;  %v3181_v55 = vsub.f32 %v3174_v33, %v3180_v12  ;;  %v4507_v12 = vpack.i.bf16 %v5039_v22, %v5034_v21 }
 0xe91   :  { %4291 = vmatprep.subr.mxu1 %v4615_v58 }
 0xe92   :  { %v5165_v6 = vpop.eup %4569  ;;  %v3182_v14 = vmul.f32 1.442695, %v3181_v55 }
 0xe93   :  { %v2674_v7 = vsel %vm299_vm6, %v5165_v6, 0.0  ;;  %v4572_v19 = vpop.eup %4571 }
 0xe94   :  { %2675 = vadd.xlane.f32.xlu1 %v2674_v7  ;;  %4575 = vpow2.f32 %v3182_v14 }
 0xe95   :  { %4577 = vpow2.f32 %v3017_v18 }
 0xe96   :  { %v5174_v20 = vpop.eup %4573 }
 0xe97   :  { %v2854_v23 = vsel %vm299_vm6, %v5174_v20, 0.0 }
 0xe9e   :  { %2349 = vrot.lane.b32.xlu0 %v5077_v59, %s4624_s29  ;;  %v2509_v59 = vsel %vm299_vm6, %v4572_v19, 0.0  ;;  %v5178_v25 = vpop.eup %4575 }
 0xe9f   :  { %v3184_v29 = vsel %vm299_vm6, %v5178_v25, 0.0  ;;  %v4578_v31 = vpop.eup %4577 }
 0xea0   :  { %v3019_v30 = vsel %vm299_vm6, %v4578_v31, 0.0 }
 0xea5   :  { %3024 = vrot.lane.b32.xlu1 %v5090_v53, %s4624_s29 }
 0xebd   :  { %2510 = vadd.xlane.f32.xlu0 %v2509_v59 }
 0xec0   :  { %v3345_v15 = vpop.xlane.xlu1 %3344 }
 0xec1   :  { %v3346_v26 = vsub.f32 %v3339_v39, %v3345_v15  ;;  %2855 = vadd.xlane.f32.xlu0 %v2854_v23 }
 0xec3   :  { %v3347_v28 = vmul.f32 1.442695, %v3346_v26 }
 0xec4   :  { %v2515_v35 = vpop.permute.xlu1 %2514 }
 0xec5   :  { %4579 = vpow2.f32 %v3347_v28  ;;  %3185 = vadd.xlane.f32.xlu0 %v3184_v29 }
 0xec8   :  { %v2680_v36 = vpop.permute.xlu1 %2679 }
 0xec9   :  { %3020 = vadd.xlane.f32.xlu1 %v3019_v30 }
 0xecc   :  { %v2860_v39 = vpop.permute.xlu1 %2859 }
 0xecf   :  { %v5183_v32 = vpop.eup %4579 }
 0xed0   :  { %v3349_v33 = vsel %vm299_vm6, %v5183_v32, 0.0 }
 0xed1   :  { %3350 = vadd.xlane.f32.xlu0 %v3349_v33 }
 0xeda   :  { %3354 = vrot.lane.b32.xlu1 %v5090_v53, %s4627_s11 }
 0xede   :  { %4513 = vrot.lane.b32.xlu1 %v4512_v27, %s5366_s3 }
 0xee7   :  { %3189 = vrot.lane.b32.xlu0 %v5090_v53, %s4625_s30 }
 0xeeb   :  { %4508 = vrot.lane.b32.xlu0 %v4507_v12, %s5366_s3 }
 0xf15   :  { %v2181_v40 = vpop.xlane.xlu0 %2180 }
 0xf16   :  { %4581 = vrcp.f32 %v2181_v40  ;;  %v2346_v41 = vpop.xlane.xlu1 %2345 }
 0xf17   :  { %4583 = vrcp.f32 %v2346_v41 }
 0xf19   :  { %v2350_v49 = vpop.permute.xlu0 %2349 }
 0xf20   :  { %v4582_v42 = vpop.eup %4581 }
 0xf21   :  { %v2183_v44 = vmul.f32 %v4582_v42, %v4566_v62  ;;  %v4584_v45 = vpop.eup %4583  ;;  %v2676_v63 = vpop.xlane.xlu1 %2675 }
 0xf22   :  { %v2348_v24 = vmul.f32 %v4584_v45, %v5159_v1 }
 0xf23   :  { %4284 = vmatmul.mubr.msk.f32.vlgmr.msra.gmra.mrb[26].mxu1 %vm299_vm6, %v2183_v44 }
 0xf24   :  { %4292 = vmatpush3.msra.mxu1 %v2350_v49  ;;  %4293 = vmatprep.mubr.msk.f32.mxu1 %vm4616_vm5, %v4615_v58 }
 0xf25   :  { %4301 = vmatprep.subr.mxu1 %v4615_v58  ;;  %v3025_v50 = vpop.permute.xlu1 %3024 }
 0xf27   :  { %4294 = vmatmul.mubr.msk.f32.vlgmr.msra.gmra.mrb[28].mxu1 %vm299_vm6, %v2348_v24 }
 0xf28   :  { %4302 = vmatpush3.msra.mxu1 %v2515_v35  ;;  %4303 = vmatprep.mubr.msk.f32.mxu1 %vm4616_vm5, %v4615_v58 }
 0xf29   :  { %4311 = vmatprep.subr.mxu1 %v4615_v58 }
 0xf4a   :  { %v2511_v27 = vpop.xlane.xlu0 %2510 }
 0xf4b   :  { %4585 = vrcp.f32 %v2511_v27 }
 0xf4c   :  { %4587 = vrcp.f32 %v2676_v63 }
 0xf4e   :  { %v2856_v53 = vpop.xlane.xlu0 %2855 }
 0xf4f   :  { %4589 = vrcp.f32 %v2856_v53 }
 0xf52   :  { %v3186_v56 = vpop.xlane.xlu0 %3185 }
 0xf55   :  { %v4586_v52 = vpop.eup %4585 }
 0xf56   :  { %v2513_v54 = vmul.f32 %v4586_v52, %v4572_v19  ;;  %v3021_v60 = vpop.xlane.xlu1 %3020  ;;  %v4588_v62 = vpop.eup %4587 }
 0xf57   :  { %4591 = vrcp.f32 %v3021_v60  ;;  %v2678_v0 = vmul.f32 %v4588_v62, %v5165_v6 }
 0xf58   :  { %4304 = vmatmul.mubr.msk.f32.vlgmr.msra.gmra.mrb[30].mxu1 %vm299_vm6, %v2513_v54  ;;  %4593 = vrcp.f32 %v3186_v56 }
 0xf59   :  { %4312 = vmatpush3.msra.mxu1 %v2680_v36  ;;  %4313 = vmatprep.mubr.msk.f32.mxu1 %vm4616_vm5, %v4615_v58  ;;  %v4590_v1 = vpop.eup %4589 }
 0xf5a   :  { %4321 = vmatprep.subr.mxu1 %v4615_v58  ;;  %v2858_v2 = vmul.f32 %v4590_v1, %v5174_v20  ;;  %v3355_v9 = vpop.permute.xlu1 %3354 }
 0xf5c   :  { %4314 = vmatmul.mubr.msk.f32.vlgmr.msra.gmra.mrb[32].mxu1 %vm299_vm6, %v2678_v0 }
 0xf5d   :  { %4322 = vmatpush3.msra.mxu1 %v2860_v39  ;;  %4323 = vmatprep.mubr.msk.f32.mxu1 %vm4616_vm5, %v4615_v58 }
 0xf5e   :  { %v3351_v3 = vpop.xlane.xlu0 %3350  ;;  %4331 = vmatprep.subr.mxu1 %v4615_v58  ;;  %v4514_v18 = vpop.permute.xlu1 %4513 }
 0xf5f   :  { %4595 = vrcp.f32 %v3351_v3  ;;  %v4516_v19 = vunpack.i.h.bf16 %v4514_v18  ;;  %v4515_v59 = vunpack.i.l.bf16 %v4514_v18 }
 0xf60   :  { %4324 = vmatmul.mubr.msk.f32.vlgmr.msra.gmra.mrb[34].mxu1 %vm299_vm6, %v2858_v2 }
 0xf61   :  { %v4592_v4 = vpop.eup %4591  ;;  %4332 = vmatpush3.msra.mxu1 %v3025_v50  ;;  %4333 = vmatprep.mubr.msk.f32.mxu1 %vm4616_vm5, %v4615_v58  ;;  %v4449_v20 = vpack.c.bf16 %v4516_v19, %v4515_v59  ;;  %v68_v19 = vld [vmem:[%s5352_s8 + $0x40] sm:$0xff]  ;;  %v69_v59 = vld [vmem:[%s5352_s8 + $0x48] sm:$0xff] }
 0xf62   :  { %v3023_v5 = vmul.f32 %v4592_v4, %v4578_v31  ;;  %v3190_v6 = vpop.permute.xlu0 %3189  ;;  %4341 = vmatprep.subr.mxu1 %v4615_v58  ;;  %v4594_v7 = vpop.eup %4593 }
 0xf63   :  { %v3188_v8 = vmul.f32 %v4594_v7, %v5178_v25 }
 0xf64   :  { %4334 = vmatmul.mubr.msk.f32.vlgmr.msra.gmra.mrb[36].mxu1 %vm299_vm6, %v3023_v5 }
 0xf65   :  { %4342 = vmatpush3.msra.mxu1 %v3190_v6  ;;  %4343 = vmatprep.mubr.msk.f32.mxu1 %vm4616_vm5, %v4615_v58 }
 0xf66   :  { %4351 = vmatprep.subr.mxu1 %v4615_v58  ;;  %v4509_v57 = vpop.permute.xlu0 %4508 }
 0xf67   :  { %v4511_v55 = vunpack.i.h.bf16 %v4509_v57  ;;  %v4510_v13 = vunpack.i.l.bf16 %v4509_v57  ;;  %v55_v57 = vld [vmem:[%s5351_s6 + $0x28] sm:$0xff] }
 0xf68   :  { %4344 = vmatmul.mubr.msk.f32.vlgmr.msra.gmra.mrb[38].mxu1 %vm299_vm6, %v3188_v8 }
 0xf69   :  { %v4596_v10 = vpop.eup %4595  ;;  %4352 = vmatpush3.msra.mxu1 %v3355_v9  ;;  %4353 = vmatprep.mubr.msk.f32.mxu1 %vm4616_vm5, %v4615_v58  ;;  %v4445_v14 = vpack.c.bf16 %v4511_v55, %v4510_v13  ;;  %v56_v13 = vld [vmem:[%s5351_s6 + $0x30] sm:$0xff] }
 0xf6a   :  { %v3353_v11 = vmul.f32 %v4596_v10, %v5183_v32 }
 0xf6b   :  { %4446 = vmatprep.subr.bf16.mxu0 %v4445_v14 }
 0xf6c   :  { %4354 = vmatmul.mubr.msk.f32.vlgmr.msra.gmra.mrb[40].mxu1 %vm299_vm6, %v3353_v11  ;;  %4448 = vmatpush3.bf16.msra.mxu0 %v4445_v14  ;;  %v57_v14 = vld [vmem:[%s5351_s6 + $0x38] sm:$0xff] }
 0xf6d   :  { %4450 = vmatprep.subr.bf16.mxu0 %v4449_v20  ;;  %v4457_v18 = vpack.c.bf16 %v57_v14, %v56_v13 }
 0xf70   :  { %4452 = vmatpush3.bf16.msra.mxu0 %v4449_v20  ;;  %v70_v20 = vld [vmem:[%s5352_s8 + $0x50] sm:$0xff] }
 0xff6   :  { %v2256_v58 = vpop.f32.mrb[26].mxu1 }
 0xff7   :  { %v4285_v15 = vpop.f32.mrb[27].mxu1 }
 0xff8   :  { %v71_v15 = vld [vmem:[%s5352_s8 + $0x58] sm:$0xff] }
 0xffa   :  { %v2421_v23 = vpop.f32.mrb[28].mxu1 }
 0xffb   :  { %2756 = vrot.lane.b32.xlu0 %v2421_v23, %s5367_s22  ;;  %v4295_v21 = vpop.f32.mrb[29].mxu1  ;;  %v4465_v23 = vpack.c.bf16 %v71_v15, %v70_v20 }
 0xffc   :  { %v72_v21 = vld [vmem:[%s5352_s8 + $0x60] sm:$0xff] }
0x102b   :  { %v2586_v22 = vpop.f32.mrb[30].mxu1 }
0x102c   :  { %2760 = vrot.lane.b32.xlu1 %v2586_v22, %s5368_s23  ;;  %v4305_v25 = vpop.f32.mrb[31].mxu1  ;;  %v73_v22 = vld [vmem:[%s5352_s8 + $0x68] sm:$0xff] }
0x102d   :  { %v4469_v25 = vpack.c.bf16 %v73_v22, %v72_v21 }
0x102f   :  { %v2751_v26 = vpop.f32.mrb[32].mxu1 }
0x1030   :  { %2764 = vrot.lane.b32.xlu1 %v2751_v26, %s5369_s24  ;;  %v4315_v28 = vpop.f32.mrb[33].mxu1 }
0x1033   :  { %v2931_v29 = vpop.f32.mrb[34].mxu1 }
0x1034   :  { %v4325_v31 = vpop.f32.mrb[35].mxu1 }
0x1037   :  { %v3096_v30 = vpop.f32.mrb[36].mxu1 }
0x1038   :  { %3431 = vrot.lane.b32.xlu0 %v3096_v30, %s5367_s22  ;;  %v4335_v32 = vpop.f32.mrb[37].mxu1 }
0x103b   :  { %v3261_v33 = vpop.f32.mrb[38].mxu1 }
0x103c   :  { %3435 = vrot.lane.b32.xlu0 %v3261_v33, %s5368_s23  ;;  %v4345_v35 = vpop.f32.mrb[39].mxu1  ;;  %v3575_v33 = vsub.s32 2, %v4993_v34 }
0x103e   :  { %v3576_v35 = vrot.slane %v4999_v37, %v3575_v33 }
0x103f   :  { %v3426_v36 = vpop.f32.mrb[40].mxu1 }
0x1040   :  { %3439 = vrot.lane.b32.xlu1 %v3426_v36, %s5369_s24  ;;  %v4355_v39 = vpop.f32.mrb[41].mxu1  ;;  %3461 = vrot.lane.b32.xlu0 %v5074_v48, %s5366_s3 }
0x106d   :  { %v2757_v40 = vpop.permute.xlu0 %2756 }
0x106e   :  { %v2767_v42 = vsel %vm299_vm6, %v2256_v58, %v2757_v40  ;;  %v4461_v58 = vpack.c.bf16 %v69_v59, %v68_v19  ;;  %v3582_v40 = vrot.slane %v5004_v38, %v3575_v33 }
0x1070   :  { %4462 = vmatprep.subr.bf16.mxu0 %v4461_v58 }
0x109e   :  { %v2761_v41 = vpop.permute.xlu1 %2760 }
0x109f   :  { %v2768_v44 = vsel %vm970_vm7, %v2767_v42, %v2761_v41 }
0x10a2   :  { %v2765_v45 = vpop.permute.xlu1 %2764 }
0x10a3   :  { %v2769_v49 = vsel %vm972_vm8, %v2768_v44, %v2765_v45 }
0x10a4   :  { %4364 = vmatprep.mubr.msk.f32.mxu0 %vm151_vm0, %v2769_v49 }
0x10aa   :  { %v3432_v24 = vpop.permute.xlu0 %3431 }
0x10ab   :  { %v3442_v27 = vsel %vm299_vm6, %v2931_v29, %v3432_v24 }
0x10ae   :  { %v3436_v63 = vpop.permute.xlu0 %3435 }
0x10af   :  { %v3443_v53 = vsel %vm970_vm7, %v3442_v27, %v3436_v63  ;;  %v74_v63 = vld [vmem:[%s5352_s8 + $0x70] sm:$0xff]  ;;  %v75_v27 = vld [vmem:[%s5352_s8 + $0x78] sm:$0xff] }
0x10b2   :  { %v3440_v50 = vpop.permute.xlu1 %3439  ;;  %v3462_v52 = vpop.permute.xlu0 %3461 }
0x10b3   :  { %v3444_v48 = vsel %vm972_vm8, %v3443_v53, %v3440_v50  ;;  %v4473_v53 = vpack.c.bf16 %v75_v27, %v74_v63  ;;  %v4005_v50 = vld [vmem:[%s5355_s7 + $0x1] ss:$0 sm:$0xff] }
0x10b4   :  { %4365 = vmatmul.mubr.msk.f32.vlgmr.msra.gmra.mrb[32].mxu0 %vm151_vm0, %v3444_v48  ;;  %v4611_v63 = vld [vmem:[%s5348_s1] sm:$0xff] }
0x10b5   :  { %4464 = vmatpush3.bf16.msra.mxu0 %v4461_v58  ;;  %v3839_v27 = vadd.f32 1e-10, %v4611_v63 }
0x10b6   :  { %4466 = vmatprep.subr.bf16.mxu0 %v4465_v23 }
0x10b9   :  { %4468 = vmatpush3.bf16.msra.mxu0 %v4465_v23  ;;  %v3791_v23 = vsub.s32 3, %v4993_v34 }
0x10ba   :  { %4470 = vmatprep.subr.bf16.mxu0 %v4469_v25 }
0x10bb   :  { %v3792_v21 = vrot.slane %v4999_v37, %v3791_v23 }
0x10bd   :  { %4472 = vmatpush3.bf16.msra.mxu0 %v4469_v25 }
0x10be   :  { %4474 = vmatprep.subr.bf16.mxu0 %v4473_v53 }
0x10c1   :  { %4476 = vmatpush3.bf16.msra.mxu0 %v4473_v53 }
0x1187   :  { %v4366_v54 = vpop.f32.mrb[32].mxu0 }
0x1188   :  { %v3542_v56 = vadd.f32 %v4366_v54, %v3462_v52  ;;  %v3536_v60 = vpop.f32.mrb[33].mxu0 }
0x1189   :  { %v3537_v62 = vadd.f32 %v3536_v60, %v3462_v52 }
0x118a   :  { %v3546_v0 = vadd.f32 %v3542_v56, %v5063_v61 }
0x118b   :  { %v3545_v1 = vadd.f32 %v3537_v62, %v5061_v46  ;;  %v54_v46 = vld [vmem:[%s5351_s6 + $0x20] sm:$0xff] }
0x118c   :  { %v3550_v2 = vsel %vm151_vm0, %v3546_v0, 0.0  ;;  %v4453_v55 = vpack.c.bf16 %v55_v57, %v54_v46 }
0x118d   :  { %3551 = vadd.xlane.f32.xlu0 %v3550_v2  ;;  %v3547_v3 = vsel %vm151_vm0, %v3545_v1, 0.0 }
0x118e   :  { %3548 = vadd.xlane.f32.xlu1 %v3547_v3  ;;  %4454 = vmatprep.subr.bf16.mxu1 %v4453_v55 }
0x118f   :  { %4456 = vmatpush3.bf16.msra.mxu1 %v4453_v55 }
0x1190   :  { %4458 = vmatprep.subr.bf16.mxu1 %v4457_v18 }
0x1193   :  { %4460 = vmatpush3.bf16.msra.mxu1 %v4457_v18 }
0x121a   :  { %v3552_v4 = vpop.xlane.xlu0 %3551 }
0x121b   :  { %v3554_v5 = vmul.f32 0.03125, %v3552_v4  ;;  %v3549_v6 = vpop.xlane.xlu1 %3548 }
0x121c   :  { %v3553_v7 = vmul.f32 0.03125, %v3549_v6 }
0x121d   :  { %v3556_v8 = vsub.f32 %v3546_v0, %v3554_v5  ;;  %v4008_v0 = vld [vmem:[%s5356_s9 + $0x1] ss:$0 sm:$0xff] }
0x121e   :  { %v3555_v9 = vsub.f32 %v3545_v1, %v3553_v7 }
0x121f   :  { %v3558_v12 = vmul.f32 %v3556_v8, %v3556_v8 }
0x1220   :  { %v3557_v10 = vmul.f32 %v3555_v9, %v3555_v9 }
0x1221   :  { %v3562_v61 = vsel %vm151_vm0, %v3558_v12, 0.0 }
0x1222   :  { %v3559_v11 = vsel %vm151_vm0, %v3557_v10, 0.0 }
0x1223   :  { %3560 = vadd.xlane.f32.xlu0 %v3559_v11 }
0x1227   :  { %3563 = vadd.xlane.f32.xlu0 %v3562_v61 }
0x12b0   :  { %v3561_v26 = vpop.xlane.xlu0 %3560 }
0x12b1   :  { %v3565_v28 = vmul.f32 0.03125, %v3561_v26 }
0x12b3   :  { %v3567_v29 = vadd.f32 1e-05, %v3565_v28  ;;  %v3798_v28 = vrot.slane %v5004_v38, %v3791_v23 }
0x12b4   :  { %v3564_v31 = vpop.xlane.xlu0 %3563 }
0x12b5   :  { %4597 = vrsqrt.f32 %v3567_v29  ;;  %v3566_v30 = vmul.f32 0.03125, %v3564_v31 }
0x12b7   :  { %v3568_v32 = vadd.f32 1e-05, %v3566_v30 }
0x12b9   :  { %4599 = vrsqrt.f32 %v3568_v32 }
0x12bf   :  { %v4598_v36 = vpop.eup %4597 }
0x12c0   :  { %v3571_v39 = vmul.f32 %v4598_v36, %v3555_v9 }
0x12c2   :  { %v3577_v41 = vmul.f32 %v3576_v35, %v3571_v39 }
0x12c3   :  { %v4600_v42 = vpop.eup %4599 }
0x12c4   :  { %v3572_v44 = vmul.f32 %v4600_v42, %v3556_v8  ;;  %v3583_v45 = vadd.f32 %v3582_v40, %v3577_v41 }
0x12c6   :  { %v3578_v49 = vmul.f32 %v3576_v35, %v3572_v44  ;;  %4375 = vmatprep.mubr.msk.f32.mxu1 %vm151_vm0, %v3583_v45 }
0x12c8   :  { %v3584_v24 = vadd.f32 %v3582_v40, %v3578_v49 }
0x12ca   :  { %4376 = vmatmul.mubr.msk.f32.vlgmr.msra.gmra.mrb[42].mxu1 %vm151_vm0, %v3584_v24 }
0x139d   :  { %v4377_v48 = vpop.f32.mrb[42].mxu1 }
0x139e   :  { %v3669_v52 = vadd.f32 %v4377_v48, %v4005_v50  ;;  %v3663_v54 = vpop.f32.mrb[43].mxu1 }
0x139f   :  { %v3664_v56 = vadd.f32 %v4005_v50, %v3663_v54 }
0x13a0   :  { %v3673_v62 = vmax.f32 %v3669_v52, 0.0 }
0x13a1   :  { %v3672_v60 = vmax.f32 %v3664_v56, 0.0 }
0x13a3   :  { %4394 = vmatprep.mubr.msk.f32.mxu0 %vm1884_vm9, %v3672_v60 }
0x13a4   :  { %4395 = vmatmul.mubr.msk.f32.vlgmr.msra.gmra.mrb[34].mxu0 %vm1884_vm9, %v3673_v62  ;;  %v3829_v62 = vsub.s32 4, %v4993_v34 }
0x1477   :  { %v4396_v1 = vpop.f32.mrb[34].mxu0 }
0x1478   :  { %v3758_v2 = vadd.f32 %v4396_v1, %v4008_v0  ;;  %v3752_v3 = vpop.f32.mrb[35].mxu0 }
0x1479   :  { %v3753_v4 = vadd.f32 %v4008_v0, %v3752_v3  ;;  %v4612_v0 = vld [vmem:[%s5353_s4] sm:$0x1f] }
0x147a   :  { %v3762_v5 = vadd.f32 %v3758_v2, %v3584_v24  ;;  %v3830_v1 = vrot.slane %v4612_v0, %v3829_v62 }
0x147b   :  { %v3761_v6 = vadd.f32 %v3753_v4, %v3583_v45 }
0x147c   :  { %v3766_v7 = vsel %vm151_vm0, %v3762_v5, 0.0 }
0x147d   :  { %3767 = vadd.xlane.f32.xlu0 %v3766_v7  ;;  %v3763_v8 = vsel %vm151_vm0, %v3761_v6, 0.0 }
0x147e   :  { %3764 = vadd.xlane.f32.xlu1 %v3763_v8 }
0x150a   :  { %v3768_v9 = vpop.xlane.xlu0 %3767 }
0x150b   :  { %v3770_v10 = vmul.f32 0.03125, %v3768_v9  ;;  %v3765_v11 = vpop.xlane.xlu1 %3764 }
0x150c   :  { %v3769_v12 = vmul.f32 0.03125, %v3765_v11 }
0x150d   :  { %v3772_v61 = vsub.f32 %v3762_v5, %v3770_v10  ;;  %v4613_v5 = vld [vmem:[%s5354_s5] sm:$0x1f] }
0x150e   :  { %v3771_v46 = vsub.f32 %v3761_v6, %v3769_v12  ;;  %v3836_v6 = vrot.slane %v4613_v5, %v3829_v62 }
0x150f   :  { %v3774_v57 = vmul.f32 %v3772_v61, %v3772_v61 }
0x1510   :  { %v3773_v55 = vmul.f32 %v3771_v46, %v3771_v46 }
0x1511   :  { %v3778_v13 = vsel %vm151_vm0, %v3774_v57, 0.0 }
0x1512   :  { %3779 = vadd.xlane.f32.xlu0 %v3778_v13  ;;  %v3775_v14 = vsel %vm151_vm0, %v3773_v55, 0.0 }
0x1513   :  { %3776 = vadd.xlane.f32.xlu1 %v3775_v14 }
0x159f   :  { %v3780_v18 = vpop.xlane.xlu0 %3779 }
0x15a0   :  { %v3782_v19 = vmul.f32 0.03125, %v3780_v18  ;;  %v3777_v59 = vpop.xlane.xlu1 %3776 }
0x15a1   :  { %v3781_v20 = vmul.f32 0.03125, %v3777_v59 }
0x15a2   :  { %v3784_v58 = vadd.f32 1e-05, %v3782_v19 }
0x15a3   :  { %v3783_v15 = vadd.f32 1e-05, %v3781_v20 }
0x15a4   :  { %4601 = vrsqrt.f32 %v3784_v58 }
0x15a5   :  { %4603 = vrsqrt.f32 %v3783_v15 }
0x15a6   :  { %4605 = vrcp.f32 %v3839_v27 }
0x15ae   :  { %v4602_v22 = vpop.eup %4601 }
0x15af   :  { %v4604_v25 = vpop.eup %4603  ;;  %v3788_v26 = vmul.f32 %v4602_v22, %v3772_v61 }
0x15b0   :  { %v3787_v29 = vmul.f32 %v4604_v25, %v3771_v46  ;;  %v4606_v53 = vpop.eup %4605 }
0x15b1   :  { %v3794_v31 = vmul.f32 %v3792_v21, %v3788_v26 }
0x15b2   :  { %v3793_v30 = vmul.f32 %v3792_v21, %v3787_v29 }
0x15b3   :  { %v3800_v32 = vadd.f32 %v3798_v28, %v3794_v31 }
0x15b4   :  { %v3799_v33 = vadd.f32 %v3798_v28, %v3793_v30 }
0x15b5   :  { %v3804_v35 = vsel %vm151_vm0, %v3800_v32, 0.0 }
0x15b6   :  { %3805 = vadd.xlane.f32.xlu0 %v3804_v35  ;;  %v3801_v36 = vsel %vm151_vm0, %v3799_v33, 0.0 }
0x15b7   :  { %3802 = vadd.xlane.f32.xlu1 %v3801_v36 }
0x1643   :  { %v3806_v39 = vpop.xlane.xlu0 %3805 }
0x1644   :  { %v3808_v40 = vmul.f32 0.03125, %v3806_v39  ;;  %v3803_v41 = vpop.xlane.xlu1 %3802 }
0x1645   :  { %v3807_v37 = vmul.f32 0.03125, %v3803_v41 }
0x1646   :  { %v3810_v42 = vsub.f32 %v3800_v32, %v3808_v40 }
0x1647   :  { %v3809_v44 = vsub.f32 %v3799_v33, %v3807_v37 }
0x1648   :  { %v3812_v45 = vmul.f32 %v3810_v42, %v3810_v42 }
0x1649   :  { %v3811_v49 = vmul.f32 %v3809_v44, %v3809_v44 }
0x164a   :  { %v3816_v38 = vsel %vm151_vm0, %v3812_v45, 0.0 }
0x164b   :  { %3817 = vadd.xlane.f32.xlu0 %v3816_v38  ;;  %v3813_v24 = vsel %vm151_vm0, %v3811_v49, 0.0 }
0x164c   :  { %3814 = vadd.xlane.f32.xlu1 %v3813_v24 }
0x165d   :  { %3846 = vperm.xlu1 %4496, %v4606_v53  }
0x16d8   :  { %v3818_v50 = vpop.xlane.xlu0 %3817 }
0x16d9   :  { %v3820_v48 = vmul.f32 0.03125, %v3818_v50  ;;  %v3815_v52 = vpop.xlane.xlu1 %3814 }
0x16da   :  { %v3819_v54 = vmul.f32 0.03125, %v3815_v52 }
0x16db   :  { %v3822_v56 = vadd.f32 1e-05, %v3820_v48 }
0x16dc   :  { %v3821_v60 = vadd.f32 1e-05, %v3819_v54 }
0x16dd   :  { %4607 = vrsqrt.f32 %v3822_v56  ;;  %v3847_v61 = vpop.permute.xlu1 %3846 }
0x16de   :  { %4609 = vrsqrt.f32 %v3821_v60 }
0x16e7   :  { %v4608_v2 = vpop.eup %4607 }
0x16e8   :  { %v4610_v3 = vpop.eup %4609  ;;  %v3826_v4 = vmul.f32 %v4608_v2, %v3810_v42 }
0x16e9   :  { %v3825_v7 = vmul.f32 %v4610_v3, %v3809_v44 }
0x16ea   :  { %v3832_v8 = vmul.f32 %v3830_v1, %v3826_v4 }
0x16eb   :  { %v3831_v9 = vmul.f32 %v3830_v1, %v3825_v7 }
0x16ec   :  { %v3838_v10 = vadd.f32 %v3836_v6, %v3832_v8 }
0x16ed   :  { %v3837_v11 = vadd.f32 %v3836_v6, %v3831_v9 }
0x16ee   :  { %v3843_v34 = vsub.f32 %v3838_v10, %v4759_v51 }
0x16ef   :  { %v3842_v12 = vsub.f32 %v3837_v11, %v4759_v51 }
0x16f0   :  { %v3850_v57 = vmul.f32 %v3847_v61, %v3843_v34 }
0x16f1   :  { %v3849_v46 = vmul.f32 %v3847_v61, %v3842_v12 }
0x16f2   :  { %v3852_v13 = vmul.f32 %v3850_v57, %v4756_v47 }
0x16f3   :  { %v3851_v55 = vmul.f32 %v3849_v46, %v4753_v43 }
0x16f4   :  { %v3854_v18 = vadd.f32 %v3852_v13, %v4716_v16 }
0x16f5   :  { %v3853_v14 = vadd.f32 %v3851_v55, %v4718_v17 }
0x16f7   :  { %3856 = vrot.lane.b32.xlu0 %v3853_v14, %s4620_s25 }
0x16fb   :  { %3892 = vrot.lane.b32.xlu0 %v3854_v18, %s4620_s25 }
0x1769   :  { %v3857_v19 = vpop.permute.xlu0 %3856 }
0x176a   :  { %3859 = vxpose.xlu1.b32.start.end [1/1] (short) (narrow) %v3857_v19, 16 }
0x176d   :  { %v3893_v59 = vpop.permute.xlu0 %3892 }
0x176e   :  { %3895 = vxpose.xlu0.b32.start.end [1/1] (short) (narrow) %v3893_v59, 16 }
0x17ea   :  { %v3875_v51 = vpop.trf.xlu1 }
0x17eb   :  { %3927 = vst.msk [vmem:[%s5357_s10] sm:$0xff] %vm299_vm6, %v3875_v51 }
0x17ee   :  { %v3911_v43 = vpop.trf.xlu0  ;;  %v3876_v47 = vpop.trf.xlu1 }
0x17ef   :  { %4011 = vst.msk [vmem:[%s5357_s10 + $0x10] sm:$0xff] %vm299_vm6, %v3911_v43  ;;  %3928 = vst.msk [vmem:[%s5357_s10 + $0x8] sm:$0xff] %vm299_vm6, %v3876_v47 }
0x17f2   :  { %v3912_v16 = vpop.trf.xlu0 }
0x17f3   :  { %4012 = vst.msk [vmem:[%s5357_s10 + $0x18] sm:$0xff] %vm299_vm6, %v3912_v16 }

</bundles_post_ra>
